<compile_context>
chip_gen: v6e
topology: v6e:2x2x1
jax: 0.10.0
libtpu: 0.0.40
codegen_flags: <defaults>
</compile_context>

<pallas_src>
import jax
import jax.numpy as jnp
from jax.experimental import pallas as pl
from jax.experimental.pallas import tpu as pltpu

# ----------------------------- hyper-params (small, consistent with module) ---
BATCH = 2
SENT_LEN = 8                  # max_sent_word_length (length_feature = 0)
DIMENSION = 32                # WORD_DIM (embedding dim)
HIDDEN = 16                   # GRU hidden_size -> bidirectional width 2H = 32
VOCAB = 20                    # VOCABULARY_word_SIZE
VOCAB_FULL = VOCAB + 2        # +<unk> +padding_idx (= VOCAB + 1, zero row)
FILTER_SIZES = (2, 3)
NUM_FILTERS = (4, 4)
TOTAL_NF = sum(NUM_FILTERS)   # 8
NUM_CLASSES = 3
FC1_DIM = 100

H = HIDDEN
C_GRU = 2 * HIDDEN                            # 32 (bidirectional GRU width)
FS_MAX = max(FILTER_SIZES)                    # 3
N_WIN = SENT_LEN - min(FILTER_SIZES) + 1      # 7 windows (fs=2)
N_VALID_BIG = SENT_LEN - FS_MAX + 1           # 6 windows valid for fs=3
T_PAD = SENT_LEN + 1                          # 9 time rows (one zero pad timestep)
NF2 = 2 * TOTAL_NF                            # 16 = word(8) + concept(8) outputs
X_CH = C_GRU + DIMENSION                      # 64 fused conv channels [h_f|h_b|conc]
OH_W = 2 * VOCAB_FULL                         # 44 (fwd + bwd one-hot blocks)
OH_WP = 48                                    # padded to a multiple of 8

# ---- parameter-slab row offsets (all sublane aligned); lane width = 6H = 96 ----
R_GX = 0                       # (48, 96) emb@W_ih (+x biases), cols [r_f r_b z_f z_b n_f n_b]
R_WHH = R_GX + OH_WP           # 48: (2H, 6H) block recurrent weight
R_FLIP = R_WHH + 2 * H         # 80: (T_PAD*B, T_PAD*B) time-flip permutation (18x18)
R_CONV = R_FLIP + 24           # 104: (X_CH, FS_MAX*NF2) = (64, 48) fused conv taps
R_HEAD = R_CONV + X_CH         # 168: (NF2, 3) folded fc1@fc2 head
R_MISC = R_HEAD + NF2          # 184: one row [bhn(2H) | conv_b(NF2) | head_b(3)]
SLAB_ROWS = R_MISC + 8         # 192
SLAB_COLS = 6 * H              # 96


# ----------------------------- Pallas kernel ----------------------------------
def bigru_cnn_kernel(ids_ref, slab_ref, conc_ref, out_ref, hseq_ref):
    f32 = jnp.float32
    B, L = BATCH, SENT_LEN
    H2 = 2 * H

    def sigmoid(x):            # tanh-based logistic: EUP tanh + 2 VALU ops, no divide
        return 0.5 * jnp.tanh(0.5 * x) + 0.5

    # -- fused embedding gather + GRU input projection (+x biases), fwd & bwd at once
    ids = ids_ref[...]                                               # (L*B, 2) int32
    vi = jax.lax.broadcasted_iota(jnp.int32, (L * B, OH_WP), 1)
    one_hot = jnp.where((vi == ids[:, 0:1]) | (vi == ids[:, 1:2]), 1.0, 0.0).astype(f32)
    gx = jnp.dot(one_hot, slab_ref[R_GX:R_GX + OH_WP, :],
                 preferred_element_type=f32)                         # (L*B, 6H)

    # -- bidirectional GRU: ONE matmul + ONE fused gate pass per timestep ---------
    whh = slab_ref[R_WHH:R_WHH + H2, :]                              # (2H, 6H)
    bhn = slab_ref[R_MISC:R_MISC + 1, 0:H2]                          # (1, 2H) [b_hn_f|b_hn_b]
    # zero only the pad-timestep rows; every other row is overwritten below
    hseq_ref[L * B:(L + 1) * B, :] = jnp.zeros((B, H2), f32)
    h = jnp.zeros((B, H2), f32)                                      # [h_fwd | h_bwd]
    for s in range(L):                                               # static unroll
        gxt = gx[s * B:(s + 1) * B, :]
        gh = jnp.dot(h, whh, preferred_element_type=f32)             # (B, 6H)
        r = sigmoid(gxt[:, 0:H2] + gh[:, 0:H2])
        z = sigmoid(gxt[:, H2:2 * H2] + gh[:, H2:2 * H2])
        n = jnp.tanh(gxt[:, 2 * H2:3 * H2] + r * (gh[:, 2 * H2:3 * H2] + bhn))
        h = (1.0 - z) * n + z * h
        hseq_ref[s * B:(s + 1) * B, :] = h                           # full-width aligned store

    hseq = hseq_ref[...]                                             # (T_PAD*B, 2H) step-major
    seq_f = hseq[:, 0:H]                                             # fwd half: already time-major
    # bwd half is step-major == time-reversed; flip with one constant permutation matmul
    flip = slab_ref[R_FLIP:R_FLIP + T_PAD * B, 0:T_PAD * B]          # (18, 18)
    seq_b = jnp.dot(flip, hseq[:, H:H2], preferred_element_type=f32)  # (18, H) time-major

    # -- word + concept convs: taps side-by-side in lanes, one matmul per channel group
    convw = slab_ref[R_CONV:R_CONV + X_CH, 0:FS_MAX * NF2]           # (64, 48)
    s_all = (jnp.dot(seq_f, convw[0:H, :], preferred_element_type=f32)
             + jnp.dot(seq_b, convw[H:H2, :], preferred_element_type=f32)
             + jnp.dot(conc_ref[...], convw[H2:X_CH, :], preferred_element_type=f32))  # (18, 48)

    NB = N_WIN * B
    s_win = (s_all[0:NB, 0:NF2]                                      # tap 0 @ time t
             + s_all[B:B + NB, NF2:2 * NF2]                          # tap 1 @ time t+1
             + s_all[2 * B:2 * B + NB, 2 * NF2:3 * NF2])             # tap 2 @ time t+2

    # -- global max-pool (tree); windows beyond the fs=3 range masked on fs=3 columns
    col = jax.lax.broadcasted_iota(jnp.int32, (B, NF2), 1)           # built once, reused
    small_cols = (col % TOTAL_NF) < NUM_FILTERS[0]                   # fs=2 output columns
    wins = [s_win[t * B:(t + 1) * B, :] for t in range(N_WIN)]
    for t in range(N_VALID_BIG, N_WIN):
        wins[t] = jnp.where(small_cols, wins[t], -jnp.inf)
    while len(wins) > 1:                                             # depth ceil(log2(7)) = 3
        nxt = [jnp.maximum(wins[i], wins[i + 1]) for i in range(0, len(wins) - 1, 2)]
        if len(wins) % 2:
            nxt.append(wins[-1])
        wins = nxt
    pooled = wins[0]                                                 # (B, 16)

    # bias + ReLU hoisted out of the pooling: max_t relu(s_t+b) == relu(max_t s_t + b)
    conv_b = slab_ref[R_MISC:R_MISC + 1, H2:H2 + NF2]
    x = jnp.maximum(pooled + conv_b, 0.0)                            # (B, 16); dropout = identity

    # -- folded fc1/fc2 head + softmax --------------------------------------------
    head_w = slab_ref[R_HEAD:R_HEAD + NF2, 0:NUM_CLASSES]            # (16, 3)
    head_b = slab_ref[R_MISC:R_MISC + 1, H2 + NF2:H2 + NF2 + NUM_CLASSES]
    logits = jnp.dot(x, head_w, preferred_element_type=f32) + head_b  # (B, 3)
    m = jnp.max(logits, axis=1, keepdims=True)
    e = jnp.exp(logits - m)
    out_ref[...] = e * pl.reciprocal(jnp.sum(e, axis=1, keepdims=True), approx=True)


# ----------------------------- trace-time packing / folding -------------------
def _dot_hp(a, b):
    return jnp.dot(a, b, precision=jax.lax.Precision.HIGHEST)


def pack_params(p):
    """Pack every constant tensor into one lane-dense (192, 96) f32 slab."""
    f32 = jnp.float32
    Hh, D, C, V = HIDDEN, DIMENSION, C_GRU, VOCAB_FULL
    nf0 = NUM_FILTERS[0]
    slab = jnp.zeros((SLAB_ROWS, SLAB_COLS), f32)

    # fused emb @ W_ih table (+ x-side biases): r,z get b_ih+b_hh, n gets b_ih only
    def xbias(bih, bhh):
        return jnp.concatenate([bih[:2 * Hh] + bhh[:2 * Hh], bih[2 * Hh:]])
    proj_f = _dot_hp(p['emb'], p['wih_f']) + xbias(p['bih_f'], p['bhh_f'])[None, :]
    proj_b = _dot_hp(p['emb'], p['wih_b']) + xbias(p['bih_b'], p['bhh_b'])[None, :]
    for g in range(3):   # gate columns laid out [r_f r_b z_f z_b n_f n_b]
        cf, cb = (2 * g) * Hh, (2 * g + 1) * Hh
        slab = slab.at[R_GX:R_GX + V, cf:cf + Hh].set(proj_f[:, g * Hh:(g + 1) * Hh])
        slab = slab.at[R_GX + V:R_GX + 2 * V, cb:cb + Hh].set(proj_b[:, g * Hh:(g + 1) * Hh])
        slab = slab.at[R_WHH:R_WHH + Hh, cf:cf + Hh].set(p['whh_f'][:, g * Hh:(g + 1) * Hh])
        slab = slab.at[R_WHH + Hh:R_WHH + 2 * Hh, cb:cb + Hh].set(p['whh_b'][:, g * Hh:(g + 1) * Hh])

    # time-flip permutation for the bwd hidden states (step-major -> time-major)
    flip = jnp.kron(jnp.flip(jnp.eye(SENT_LEN, dtype=f32), axis=1),
                    jnp.eye(BATCH, dtype=f32))                        # (L*B, L*B)
    slab = slab.at[R_FLIP:R_FLIP + SENT_LEN * BATCH, 0:SENT_LEN * BATCH].set(flip)

    # fused conv taps: rows = [h_f(16) | h_b(16) | concept(32)] channels,
    # cols = [tap0 | tap1 | tap2] x [word fs2, word fs3, conc fs2, conc fs3]
    for k in range(FS_MAX):
        c0 = k * NF2
        if k < FILTER_SIZES[0]:   # fs=2 has taps 0..1 only (tap 2 stays zero)
            slab = slab.at[R_CONV:R_CONV + C, c0:c0 + nf0].set(p['ww2'][k * C:(k + 1) * C, :])
            slab = slab.at[R_CONV + C:R_CONV + C + D,
                           c0 + 2 * nf0:c0 + 3 * nf0].set(p['cw2'][k * D:(k + 1) * D, :])
        slab = slab.at[R_CONV:R_CONV + C, c0 + nf0:c0 + 2 * nf0].set(p['ww3'][k * C:(k + 1) * C, :])
        slab = slab.at[R_CONV + C:R_CONV + C + D,
                       c0 + 3 * nf0:c0 + 4 * nf0].set(p['cw3'][k * D:(k + 1) * D, :])

    # fc1 @ fc2 folded head (valid: dropout=identity, no activation between fc1/fc2)
    w2a = p['fc2w'][:FC1_DIM, :]
    w2b = p['fc2w'][FC1_DIM:, :]
    head_w = jnp.concatenate([_dot_hp(p['fc1w'], w2a), _dot_hp(p['fc1w'], w2b)], axis=0)
    head_b = _dot_hp(p['fc1b'][None, :], w2a + w2b) + p['fc2b'][None, :]
    slab = slab.at[R_HEAD:R_HEAD + NF2, 0:NUM_CLASSES].set(head_w)

    # misc row: [b_hn_f|b_hn_b (2H)] [conv biases (16)] [head bias (3)]
    bhn = jnp.concatenate([p['bhh_f'][2 * Hh:], p['bhh_b'][2 * Hh:]])
    conv_b = jnp.concatenate([p['wb2'], p['wb3'], p['cb2'], p['cb3']])
    misc = jnp.concatenate([bhn, conv_b, head_b[0]])
    slab = slab.at[R_MISC, 0:misc.shape[0]].set(misc)
    return slab


@jax.jit
def forward_pallas(p, ids, concepts):
    slab = pack_params(p)

    # fused fwd/bwd token ids, time-major: col0 = id(t), col1 = id(L-1-t) + VOCAB_FULL
    ids_f = ids.T.reshape(SENT_LEN * BATCH)
    ids_b = ids[:, ::-1].T.reshape(SENT_LEN * BATCH) + VOCAB_FULL
    ids2 = jnp.stack([ids_f, ids_b], axis=1).astype(jnp.int32)        # (L*B, 2)

    # concepts, time-major with one zero pad timestep: (T_PAD*B, D)
    conc_tm = jnp.concatenate(
        [jnp.transpose(concepts, (1, 0, 2)).reshape(SENT_LEN * BATCH, DIMENSION),
         jnp.zeros((BATCH, DIMENSION), jnp.float32)], axis=0)

    vmem = pl.BlockSpec(memory_space=pltpu.MemorySpace.VMEM)
    return pl.pallas_call(
        bigru_cnn_kernel,
        out_shape=jax.ShapeDtypeStruct((BATCH, NUM_CLASSES), jnp.float32),
        in_specs=[vmem, vmem, vmem],
        out_specs=vmem,
        scratch_shapes=[
            pltpu.VMEM((T_PAD * BATCH, 2 * HIDDEN), jnp.float32),     # step-major GRU states
        ],
    )(ids2, slab, conc_tm)


# ----------------------------- parameter init (deterministic) -----------------
def init_params(key):
    Hh, D, C = HIDDEN, DIMENSION, C_GRU
    ks = iter(jax.random.split(key, 32))

    def rnd(shape, scale=0.25):
        return scale * jax.random.normal(next(ks), shape, dtype=jnp.float32)

    p = {}
    emb = rnd((VOCAB_FULL, D))
    p['emb'] = emb.at[VOCAB + 1].set(0.0)                 # padding_idx row zeroed
    for d in ('f', 'b'):                                  # GRU fwd / bwd, gate order (r,z,n)
        p[f'wih_{d}'] = rnd((D, 3 * Hh))
        p[f'whh_{d}'] = rnd((Hh, 3 * Hh))
        p[f'bih_{d}'] = rnd((3 * Hh,))
        p[f'bhh_{d}'] = rnd((3 * Hh,))
    for src, ch in (('w', C), ('c', D)):                  # word / concept conv branches
        for fs, nf in zip(FILTER_SIZES, NUM_FILTERS):
            p[f'{src}w{fs}'] = rnd((fs * ch, nf))
            p[f'{src}b{fs}'] = rnd((nf,))
    p['fc1w'] = rnd((TOTAL_NF, FC1_DIM))
    p['fc1b'] = rnd((FC1_DIM,))
    p['fc2w'] = rnd((2 * FC1_DIM, NUM_CLASSES))
    p['fc2b'] = rnd((NUM_CLASSES,))
    return p


# ----------------------------- pure-JAX reference (sanity check) --------------
def forward_ref(p, ids, concepts):
    Hh = HIDDEN
    emb = jnp.take(p['emb'], ids, axis=0)                 # (B, L, D)

    def gru_dir(wih, whh, bih, bhh, reverse):
        h = jnp.zeros((BATCH, Hh), jnp.float32)
        outs = [None] * SENT_LEN
        order = range(SENT_LEN - 1, -1, -1) if reverse else range(SENT_LEN)
        for t in order:
            gi = _dot_hp(emb[:, t, :], wih) + bih
            gh = _dot_hp(h, whh) + bhh
            r = jax.nn.sigmoid(gi[:, :Hh] + gh[:, :Hh])
            z = jax.nn.sigmoid(gi[:, Hh:2 * Hh] + gh[:, Hh:2 * Hh])
            n = jnp.tanh(gi[:, 2 * Hh:] + r * gh[:, 2 * Hh:])
            h = (1.0 - z) * n + z * h
            outs[t] = h
        return jnp.stack(outs, axis=1)                    # (B, L, H)

    out_f = gru_dir(p['wih_f'], p['whh_f'], p['bih_f'], p['bhh_f'], False)
    out_b = gru_dir(p['wih_b'], p['whh_b'], p['bih_b'], p['bhh_b'], True)
    gru_out = jnp.concatenate([out_f, out_b], axis=2)     # (B, L, 2H)

    def conv_branch(src, w, b, fs):
        bsz, seq, ch = src.shape
        flat = src.reshape(bsz, seq * ch)
        n_pos = seq - fs + 1
        sc = jnp.stack([_dot_hp(flat[:, t * ch:(t + fs) * ch], w)
                        for t in range(n_pos)], axis=1) + b
        return jnp.max(jax.nn.relu(sc), axis=1)           # (B, nf)

    xw = jnp.concatenate([conv_branch(gru_out, p['ww2'], p['wb2'], 2),
                          conv_branch(gru_out, p['ww3'], p['wb3'], 3)], axis=1)
    xc = jnp.concatenate([conv_branch(concepts, p['cw2'], p['cb2'], 2),
                          conv_branch(concepts, p['cw3'], p['cb3'], 3)], axis=1)
    # dropout = identity (eval)
    yw = _dot_hp(xw, p['fc1w']) + p['fc1b']
    yc = _dot_hp(xc, p['fc1w']) + p['fc1b']
    logits = _dot_hp(jnp.concatenate([yw, yc], axis=1), p['fc2w']) + p['fc2b']
    return jax.nn.softmax(logits, axis=1)


# ----------------------------- main --------------------------------------------
if __name__ == "__main__":
    key = jax.random.PRNGKey(0)
    k_param, k_ids, k_conc = jax.random.split(key, 3)

    params = init_params(k_param)
    input_ids = jax.random.randint(k_ids, (BATCH, SENT_LEN), 0, VOCAB_FULL,
                                   dtype=jnp.int32)
    # TODO(synk): stand-in for get_concept (external dicts / numpy RNG): the OOV path
    # of the module draws uniform(-0.01, 0.01, D) per word, mimicked here.
    concepts = jax.random.uniform(k_conc, (BATCH, SENT_LEN, DIMENSION),
                                  minval=-0.01, maxval=0.01, dtype=jnp.float32)

    out = forward_pallas(params, input_ids, concepts)
    out = jax.block_until_ready(out)

    ref = forward_ref(params, input_ids, concepts)
    assert out.shape == (BATCH, NUM_CLASSES)
    assert jnp.allclose(out, ref, atol=5e-3, rtol=5e-3), (out, ref)
    assert jnp.allclose(jnp.sum(out, axis=1), 1.0, atol=5e-3)

    print("KERNEL_OK")
</pallas_src>

<mosaic_0001>
module attributes {stable_mosaic.version = 11 : i64} {
  func.func @bigru_cnn_kernel(%arg0: memref<16x2xi32, #tpu.memory_space<vmem>>, %arg1: memref<192x96xf32, #tpu.memory_space<vmem>>, %arg2: memref<18x32xf32, #tpu.memory_space<vmem>>, %arg3: memref<2x3xf32, #tpu.memory_space<vmem>>, %arg4: memref<18x32xf32, #tpu.memory_space<vmem>>) attributes {dimension_semantics = [], scalar_prefetch = 0 : i64, scratch_operands = 1 : i64, tpu.core_type = #tpu.core_type<tc>} {
    %c0 = arith.constant 0 : index
    %c0_0 = arith.constant 0 : index
    %0 = vector.load %arg0[%c0, %c0_0] : memref<16x2xi32, #tpu.memory_space<vmem>>, vector<16x2xi32>
    %1 = tpu.iota {dimensions = array<i32: 1>} : vector<16x48xi32>
    %2 = vector.extract_strided_slice %0 {offsets = [0, 0], sizes = [16, 1], strides = [1, 1]} : vector<16x2xi32> to vector<16x1xi32>
    %3 = vector.broadcast %2 : vector<16x1xi32> to vector<16x48xi32>
    %4 = arith.cmpi eq, %1, %3 : vector<16x48xi32>
    %5 = vector.extract_strided_slice %0 {offsets = [0, 1], sizes = [16, 1], strides = [1, 1]} : vector<16x2xi32> to vector<16x1xi32>
    %6 = vector.broadcast %5 : vector<16x1xi32> to vector<16x48xi32>
    %7 = arith.cmpi eq, %1, %6 : vector<16x48xi32>
    %8 = arith.ori %4, %7 : vector<16x48xi1>
    %cst = arith.constant 1.000000e+00 : f32
    %cst_1 = arith.constant 0.000000e+00 : f32
    %9 = vector.broadcast %cst : f32 to vector<16x48xf32>
    %10 = vector.broadcast %cst_1 : f32 to vector<16x48xf32>
    %11 = arith.select %8, %9, %10 : vector<16x48xi1>, vector<16x48xf32>
    %c0_2 = arith.constant 0 : index
    %c0_3 = arith.constant 0 : index
    %12 = vector.load %arg1[%c0_2, %c0_3] : memref<192x96xf32, #tpu.memory_space<vmem>>, vector<48x96xf32>
    %cst_4 = arith.constant dense<0.000000e+00> : vector<16x96xf32>
    %13 = tpu.matmul %11, %12, %cst_4 {dimension_numbers = #tpu.dot_dimension_numbers<[1], [0], [0], [1], [0, 0, 1, 1], [], []>} : vector<16x48xf32>, vector<48x96xf32>, vector<16x96xf32> -> vector<16x96xf32>
    %c48 = arith.constant 48 : index
    %c0_5 = arith.constant 0 : index
    %14 = vector.load %arg1[%c48, %c0_5] : memref<192x96xf32, #tpu.memory_space<vmem>>, vector<32x96xf32>
    %c184 = arith.constant 184 : index
    %c0_6 = arith.constant 0 : index
    %15 = vector.load %arg1[%c184, %c0_6] : memref<192x96xf32, #tpu.memory_space<vmem>>, vector<1x32xf32>
    %cst_7 = arith.constant 0.000000e+00 : f32
    %16 = vector.broadcast %cst_7 : f32 to vector<2x32xf32>
    %c16 = arith.constant 16 : index
    %c0_8 = arith.constant 0 : index
    %17 = vector.load %arg4[%c16, %c0_8] : memref<18x32xf32, #tpu.memory_space<vmem>>, vector<2x32xf32>
    tpu.vector_store %arg4[%c16, %c0_8], %16 {strides = array<i32>} : memref<18x32xf32, #tpu.memory_space<vmem>>, vector<2x32xf32>,
    %cst_9 = arith.constant 0.000000e+00 : f32
    %18 = vector.broadcast %cst_9 : f32 to vector<2x32xf32>
    %19 = vector.extract_strided_slice %13 {offsets = [0, 0], sizes = [2, 96], strides = [1, 1]} : vector<16x96xf32> to vector<2x96xf32>
    %cst_10 = arith.constant dense<0.000000e+00> : vector<2x96xf32>
    %20 = tpu.matmul %18, %14, %cst_10 {dimension_numbers = #tpu.dot_dimension_numbers<[1], [0], [0], [1], [0, 0, 1, 1], [], []>} : vector<2x32xf32>, vector<32x96xf32>, vector<2x96xf32> -> vector<2x96xf32>
    %21 = vector.extract_strided_slice %19 {offsets = [0, 0], sizes = [2, 32], strides = [1, 1]} : vector<2x96xf32> to vector<2x32xf32>
    %22 = vector.extract_strided_slice %20 {offsets = [0, 0], sizes = [2, 32], strides = [1, 1]} : vector<2x96xf32> to vector<2x32xf32>
    %23 = arith.addf %21, %22 : vector<2x32xf32>
    %cst_11 = arith.constant 5.000000e-01 : f32
    %24 = vector.broadcast %cst_11 : f32 to vector<2x32xf32>
    %25 = arith.mulf %24, %23 : vector<2x32xf32>
    %26 = math.tanh %25 : vector<2x32xf32>
    %cst_12 = arith.constant 5.000000e-01 : f32
    %27 = vector.broadcast %cst_12 : f32 to vector<2x32xf32>
    %28 = arith.mulf %27, %26 : vector<2x32xf32>
    %cst_13 = arith.constant 5.000000e-01 : f32
    %29 = vector.broadcast %cst_13 : f32 to vector<2x32xf32>
    %30 = arith.addf %28, %29 : vector<2x32xf32>
    %31 = vector.extract_strided_slice %19 {offsets = [0, 32], sizes = [2, 32], strides = [1, 1]} : vector<2x96xf32> to vector<2x32xf32>
    %32 = vector.extract_strided_slice %20 {offsets = [0, 32], sizes = [2, 32], strides = [1, 1]} : vector<2x96xf32> to vector<2x32xf32>
    %33 = arith.addf %31, %32 : vector<2x32xf32>
    %cst_14 = arith.constant 5.000000e-01 : f32
    %34 = vector.broadcast %cst_14 : f32 to vector<2x32xf32>
    %35 = arith.mulf %34, %33 : vector<2x32xf32>
    %36 = math.tanh %35 : vector<2x32xf32>
    %cst_15 = arith.constant 5.000000e-01 : f32
    %37 = vector.broadcast %cst_15 : f32 to vector<2x32xf32>
    %38 = arith.mulf %37, %36 : vector<2x32xf32>
    %cst_16 = arith.constant 5.000000e-01 : f32
    %39 = vector.broadcast %cst_16 : f32 to vector<2x32xf32>
    %40 = arith.addf %38, %39 : vector<2x32xf32>
    %41 = vector.extract_strided_slice %19 {offsets = [0, 64], sizes = [2, 32], strides = [1, 1]} : vector<2x96xf32> to vector<2x32xf32>
    %42 = vector.extract_strided_slice %20 {offsets = [0, 64], sizes = [2, 32], strides = [1, 1]} : vector<2x96xf32> to vector<2x32xf32>
    %43 = vector.broadcast %15 : vector<1x32xf32> to vector<2x32xf32>
    %44 = arith.addf %42, %43 : vector<2x32xf32>
    %45 = arith.mulf %30, %44 : vector<2x32xf32>
    %46 = arith.addf %41, %45 : vector<2x32xf32>
    %47 = math.tanh %46 : vector<2x32xf32>
    %cst_17 = arith.constant 1.000000e+00 : f32
    %48 = vector.broadcast %cst_17 : f32 to vector<2x32xf32>
    %49 = arith.subf %48, %40 : vector<2x32xf32>
    %50 = arith.mulf %49, %47 : vector<2x32xf32>
    %51 = arith.mulf %40, %18 : vector<2x32xf32>
    %52 = arith.addf %50, %51 : vector<2x32xf32>
    %c0_18 = arith.constant 0 : index
    %c0_19 = arith.constant 0 : index
    %53 = vector.load %arg4[%c0_18, %c0_19] : memref<18x32xf32, #tpu.memory_space<vmem>>, vector<2x32xf32>
    tpu.vector_store %arg4[%c0_18, %c0_19], %52 {strides = array<i32>} : memref<18x32xf32, #tpu.memory_space<vmem>>, vector<2x32xf32>,
    %54 = vector.extract_strided_slice %13 {offsets = [2, 0], sizes = [2, 96], strides = [1, 1]} : vector<16x96xf32> to vector<2x96xf32>
    %cst_20 = arith.constant dense<0.000000e+00> : vector<2x96xf32>
    %55 = tpu.matmul %52, %14, %cst_20 {dimension_numbers = #tpu.dot_dimension_numbers<[1], [0], [0], [1], [0, 0, 1, 1], [], []>} : vector<2x32xf32>, vector<32x96xf32>, vector<2x96xf32> -> vector<2x96xf32>
    %56 = vector.extract_strided_slice %54 {offsets = [0, 0], sizes = [2, 32], strides = [1, 1]} : vector<2x96xf32> to vector<2x32xf32>
    %57 = vector.extract_strided_slice %55 {offsets = [0, 0], sizes = [2, 32], strides = [1, 1]} : vector<2x96xf32> to vector<2x32xf32>
    %58 = arith.addf %56, %57 : vector<2x32xf32>
    %cst_21 = arith.constant 5.000000e-01 : f32
    %59 = vector.broadcast %cst_21 : f32 to vector<2x32xf32>
    %60 = arith.mulf %59, %58 : vector<2x32xf32>
    %61 = math.tanh %60 : vector<2x32xf32>
    %cst_22 = arith.constant 5.000000e-01 : f32
    %62 = vector.broadcast %cst_22 : f32 to vector<2x32xf32>
    %63 = arith.mulf %62, %61 : vector<2x32xf32>
    %cst_23 = arith.constant 5.000000e-01 : f32
    %64 = vector.broadcast %cst_23 : f32 to vector<2x32xf32>
    %65 = arith.addf %63, %64 : vector<2x32xf32>
    %66 = vector.extract_strided_slice %54 {offsets = [0, 32], sizes = [2, 32], strides = [1, 1]} : vector<2x96xf32> to vector<2x32xf32>
    %67 = vector.extract_strided_slice %55 {offsets = [0, 32], sizes = [2, 32], strides = [1, 1]} : vector<2x96xf32> to vector<2x32xf32>
    %68 = arith.addf %66, %67 : vector<2x32xf32>
    %cst_24 = arith.constant 5.000000e-01 : f32
    %69 = vector.broadcast %cst_24 : f32 to vector<2x32xf32>
    %70 = arith.mulf %69, %68 : vector<2x32xf32>
    %71 = math.tanh %70 : vector<2x32xf32>
    %cst_25 = arith.constant 5.000000e-01 : f32
    %72 = vector.broadcast %cst_25 : f32 to vector<2x32xf32>
    %73 = arith.mulf %72, %71 : vector<2x32xf32>
    %cst_26 = arith.constant 5.000000e-01 : f32
    %74 = vector.broadcast %cst_26 : f32 to vector<2x32xf32>
    %75 = arith.addf %73, %74 : vector<2x32xf32>
    %76 = vector.extract_strided_slice %54 {offsets = [0, 64], sizes = [2, 32], strides = [1, 1]} : vector<2x96xf32> to vector<2x32xf32>
    %77 = vector.extract_strided_slice %55 {offsets = [0, 64], sizes = [2, 32], strides = [1, 1]} : vector<2x96xf32> to vector<2x32xf32>
    %78 = vector.broadcast %15 : vector<1x32xf32> to vector<2x32xf32>
    %79 = arith.addf %77, %78 : vector<2x32xf32>
    %80 = arith.mulf %65, %79 : vector<2x32xf32>
    %81 = arith.addf %76, %80 : vector<2x32xf32>
    %82 = math.tanh %81 : vector<2x32xf32>
    %cst_27 = arith.constant 1.000000e+00 : f32
    %83 = vector.broadcast %cst_27 : f32 to vector<2x32xf32>
    %84 = arith.subf %83, %75 : vector<2x32xf32>
    %85 = arith.mulf %84, %82 : vector<2x32xf32>
    %86 = arith.mulf %75, %52 : vector<2x32xf32>
    %87 = arith.addf %85, %86 : vector<2x32xf32>
    %c2 = arith.constant 2 : index
    %c0_28 = arith.constant 0 : index
    %88 = vector.load %arg4[%c2, %c0_28] : memref<18x32xf32, #tpu.memory_space<vmem>>, vector<2x32xf32>
    tpu.vector_store %arg4[%c2, %c0_28], %87 {strides = array<i32>} : memref<18x32xf32, #tpu.memory_space<vmem>>, vector<2x32xf32>,
    %89 = vector.extract_strided_slice %13 {offsets = [4, 0], sizes = [2, 96], strides = [1, 1]} : vector<16x96xf32> to vector<2x96xf32>
    %cst_29 = arith.constant dense<0.000000e+00> : vector<2x96xf32>
    %90 = tpu.matmul %87, %14, %cst_29 {dimension_numbers = #tpu.dot_dimension_numbers<[1], [0], [0], [1], [0, 0, 1, 1], [], []>} : vector<2x32xf32>, vector<32x96xf32>, vector<2x96xf32> -> vector<2x96xf32>
    %91 = vector.extract_strided_slice %89 {offsets = [0, 0], sizes = [2, 32], strides = [1, 1]} : vector<2x96xf32> to vector<2x32xf32>
    %92 = vector.extract_strided_slice %90 {offsets = [0, 0], sizes = [2, 32], strides = [1, 1]} : vector<2x96xf32> to vector<2x32xf32>
    %93 = arith.addf %91, %92 : vector<2x32xf32>
    %cst_30 = arith.constant 5.000000e-01 : f32
    %94 = vector.broadcast %cst_30 : f32 to vector<2x32xf32>
    %95 = arith.mulf %94, %93 : vector<2x32xf32>
    %96 = math.tanh %95 : vector<2x32xf32>
    %cst_31 = arith.constant 5.000000e-01 : f32
    %97 = vector.broadcast %cst_31 : f32 to vector<2x32xf32>
    %98 = arith.mulf %97, %96 : vector<2x32xf32>
    %cst_32 = arith.constant 5.000000e-01 : f32
    %99 = vector.broadcast %cst_32 : f32 to vector<2x32xf32>
    %100 = arith.addf %98, %99 : vector<2x32xf32>
    %101 = vector.extract_strided_slice %89 {offsets = [0, 32], sizes = [2, 32], strides = [1, 1]} : vector<2x96xf32> to vector<2x32xf32>
    %102 = vector.extract_strided_slice %90 {offsets = [0, 32], sizes = [2, 32], strides = [1, 1]} : vector<2x96xf32> to vector<2x32xf32>
    %103 = arith.addf %101, %102 : vector<2x32xf32>
    %cst_33 = arith.constant 5.000000e-01 : f32
    %104 = vector.broadcast %cst_33 : f32 to vector<2x32xf32>
    %105 = arith.mulf %104, %103 : vector<2x32xf32>
    %106 = math.tanh %105 : vector<2x32xf32>
    %cst_34 = arith.constant 5.000000e-01 : f32
    %107 = vector.broadcast %cst_34 : f32 to vector<2x32xf32>
    %108 = arith.mulf %107, %106 : vector<2x32xf32>
    %cst_35 = arith.constant 5.000000e-01 : f32
    %109 = vector.broadcast %cst_35 : f32 to vector<2x32xf32>
    %110 = arith.addf %108, %109 : vector<2x32xf32>
    %111 = vector.extract_strided_slice %89 {offsets = [0, 64], sizes = [2, 32], strides = [1, 1]} : vector<2x96xf32> to vector<2x32xf32>
    %112 = vector.extract_strided_slice %90 {offsets = [0, 64], sizes = [2, 32], strides = [1, 1]} : vector<2x96xf32> to vector<2x32xf32>
    %113 = vector.broadcast %15 : vector<1x32xf32> to vector<2x32xf32>
    %114 = arith.addf %112, %113 : vector<2x32xf32>
    %115 = arith.mulf %100, %114 : vector<2x32xf32>
    %116 = arith.addf %111, %115 : vector<2x32xf32>
    %117 = math.tanh %116 : vector<2x32xf32>
    %cst_36 = arith.constant 1.000000e+00 : f32
    %118 = vector.broadcast %cst_36 : f32 to vector<2x32xf32>
    %119 = arith.subf %118, %110 : vector<2x32xf32>
    %120 = arith.mulf %119, %117 : vector<2x32xf32>
    %121 = arith.mulf %110, %87 : vector<2x32xf32>
    %122 = arith.addf %120, %121 : vector<2x32xf32>
    %c4 = arith.constant 4 : index
    %c0_37 = arith.constant 0 : index
    %123 = vector.load %arg4[%c4, %c0_37] : memref<18x32xf32, #tpu.memory_space<vmem>>, vector<2x32xf32>
    tpu.vector_store %arg4[%c4, %c0_37], %122 {strides = array<i32>} : memref<18x32xf32, #tpu.memory_space<vmem>>, vector<2x32xf32>,
    %124 = vector.extract_strided_slice %13 {offsets = [6, 0], sizes = [2, 96], strides = [1, 1]} : vector<16x96xf32> to vector<2x96xf32>
    %cst_38 = arith.constant dense<0.000000e+00> : vector<2x96xf32>
    %125 = tpu.matmul %122, %14, %cst_38 {dimension_numbers = #tpu.dot_dimension_numbers<[1], [0], [0], [1], [0, 0, 1, 1], [], []>} : vector<2x32xf32>, vector<32x96xf32>, vector<2x96xf32> -> vector<2x96xf32>
    %126 = vector.extract_strided_slice %124 {offsets = [0, 0], sizes = [2, 32], strides = [1, 1]} : vector<2x96xf32> to vector<2x32xf32>
    %127 = vector.extract_strided_slice %125 {offsets = [0, 0], sizes = [2, 32], strides = [1, 1]} : vector<2x96xf32> to vector<2x32xf32>
    %128 = arith.addf %126, %127 : vector<2x32xf32>
    %cst_39 = arith.constant 5.000000e-01 : f32
    %129 = vector.broadcast %cst_39 : f32 to vector<2x32xf32>
    %130 = arith.mulf %129, %128 : vector<2x32xf32>
    %131 = math.tanh %130 : vector<2x32xf32>
    %cst_40 = arith.constant 5.000000e-01 : f32
    %132 = vector.broadcast %cst_40 : f32 to vector<2x32xf32>
    %133 = arith.mulf %132, %131 : vector<2x32xf32>
    %cst_41 = arith.constant 5.000000e-01 : f32
    %134 = vector.broadcast %cst_41 : f32 to vector<2x32xf32>
    %135 = arith.addf %133, %134 : vector<2x32xf32>
    %136 = vector.extract_strided_slice %124 {offsets = [0, 32], sizes = [2, 32], strides = [1, 1]} : vector<2x96xf32> to vector<2x32xf32>
    %137 = vector.extract_strided_slice %125 {offsets = [0, 32], sizes = [2, 32], strides = [1, 1]} : vector<2x96xf32> to vector<2x32xf32>
    %138 = arith.addf %136, %137 : vector<2x32xf32>
    %cst_42 = arith.constant 5.000000e-01 : f32
    %139 = vector.broadcast %cst_42 : f32 to vector<2x32xf32>
    %140 = arith.mulf %139, %138 : vector<2x32xf32>
    %141 = math.tanh %140 : vector<2x32xf32>
    %cst_43 = arith.constant 5.000000e-01 : f32
    %142 = vector.broadcast %cst_43 : f32 to vector<2x32xf32>
    %143 = arith.mulf %142, %141 : vector<2x32xf32>
    %cst_44 = arith.constant 5.000000e-01 : f32
    %144 = vector.broadcast %cst_44 : f32 to vector<2x32xf32>
    %145 = arith.addf %143, %144 : vector<2x32xf32>
    %146 = vector.extract_strided_slice %124 {offsets = [0, 64], sizes = [2, 32], strides = [1, 1]} : vector<2x96xf32> to vector<2x32xf32>
    %147 = vector.extract_strided_slice %125 {offsets = [0, 64], sizes = [2, 32], strides = [1, 1]} : vector<2x96xf32> to vector<2x32xf32>
    %148 = vector.broadcast %15 : vector<1x32xf32> to vector<2x32xf32>
    %149 = arith.addf %147, %148 : vector<2x32xf32>
    %150 = arith.mulf %135, %149 : vector<2x32xf32>
    %151 = arith.addf %146, %150 : vector<2x32xf32>
    %152 = math.tanh %151 : vector<2x32xf32>
    %cst_45 = arith.constant 1.000000e+00 : f32
    %153 = vector.broadcast %cst_45 : f32 to vector<2x32xf32>
    %154 = arith.subf %153, %145 : vector<2x32xf32>
    %155 = arith.mulf %154, %152 : vector<2x32xf32>
    %156 = arith.mulf %145, %122 : vector<2x32xf32>
    %157 = arith.addf %155, %156 : vector<2x32xf32>
    %c6 = arith.constant 6 : index
    %c0_46 = arith.constant 0 : index
    %158 = vector.load %arg4[%c6, %c0_46] : memref<18x32xf32, #tpu.memory_space<vmem>>, vector<2x32xf32>
    tpu.vector_store %arg4[%c6, %c0_46], %157 {strides = array<i32>} : memref<18x32xf32, #tpu.memory_space<vmem>>, vector<2x32xf32>,
    %159 = vector.extract_strided_slice %13 {offsets = [8, 0], sizes = [2, 96], strides = [1, 1]} : vector<16x96xf32> to vector<2x96xf32>
    %cst_47 = arith.constant dense<0.000000e+00> : vector<2x96xf32>
    %160 = tpu.matmul %157, %14, %cst_47 {dimension_numbers = #tpu.dot_dimension_numbers<[1], [0], [0], [1], [0, 0, 1, 1], [], []>} : vector<2x32xf32>, vector<32x96xf32>, vector<2x96xf32> -> vector<2x96xf32>
    %161 = vector.extract_strided_slice %159 {offsets = [0, 0], sizes = [2, 32], strides = [1, 1]} : vector<2x96xf32> to vector<2x32xf32>
    %162 = vector.extract_strided_slice %160 {offsets = [0, 0], sizes = [2, 32], strides = [1, 1]} : vector<2x96xf32> to vector<2x32xf32>
    %163 = arith.addf %161, %162 : vector<2x32xf32>
    %cst_48 = arith.constant 5.000000e-01 : f32
    %164 = vector.broadcast %cst_48 : f32 to vector<2x32xf32>
    %165 = arith.mulf %164, %163 : vector<2x32xf32>
    %166 = math.tanh %165 : vector<2x32xf32>
    %cst_49 = arith.constant 5.000000e-01 : f32
    %167 = vector.broadcast %cst_49 : f32 to vector<2x32xf32>
    %168 = arith.mulf %167, %166 : vector<2x32xf32>
    %cst_50 = arith.constant 5.000000e-01 : f32
    %169 = vector.broadcast %cst_50 : f32 to vector<2x32xf32>
    %170 = arith.addf %168, %169 : vector<2x32xf32>
    %171 = vector.extract_strided_slice %159 {offsets = [0, 32], sizes = [2, 32], strides = [1, 1]} : vector<2x96xf32> to vector<2x32xf32>
    %172 = vector.extract_strided_slice %160 {offsets = [0, 32], sizes = [2, 32], strides = [1, 1]} : vector<2x96xf32> to vector<2x32xf32>
    %173 = arith.addf %171, %172 : vector<2x32xf32>
    %cst_51 = arith.constant 5.000000e-01 : f32
    %174 = vector.broadcast %cst_51 : f32 to vector<2x32xf32>
    %175 = arith.mulf %174, %173 : vector<2x32xf32>
    %176 = math.tanh %175 : vector<2x32xf32>
    %cst_52 = arith.constant 5.000000e-01 : f32
    %177 = vector.broadcast %cst_52 : f32 to vector<2x32xf32>
    %178 = arith.mulf %177, %176 : vector<2x32xf32>
    %cst_53 = arith.constant 5.000000e-01 : f32
    %179 = vector.broadcast %cst_53 : f32 to vector<2x32xf32>
    %180 = arith.addf %178, %179 : vector<2x32xf32>
    %181 = vector.extract_strided_slice %159 {offsets = [0, 64], sizes = [2, 32], strides = [1, 1]} : vector<2x96xf32> to vector<2x32xf32>
    %182 = vector.extract_strided_slice %160 {offsets = [0, 64], sizes = [2, 32], strides = [1, 1]} : vector<2x96xf32> to vector<2x32xf32>
    %183 = vector.broadcast %15 : vector<1x32xf32> to vector<2x32xf32>
    %184 = arith.addf %182, %183 : vector<2x32xf32>
    %185 = arith.mulf %170, %184 : vector<2x32xf32>
    %186 = arith.addf %181, %185 : vector<2x32xf32>
    %187 = math.tanh %186 : vector<2x32xf32>
    %cst_54 = arith.constant 1.000000e+00 : f32
    %188 = vector.broadcast %cst_54 : f32 to vector<2x32xf32>
    %189 = arith.subf %188, %180 : vector<2x32xf32>
    %190 = arith.mulf %189, %187 : vector<2x32xf32>
    %191 = arith.mulf %180, %157 : vector<2x32xf32>
    %192 = arith.addf %190, %191 : vector<2x32xf32>
    %c8 = arith.constant 8 : index
    %c0_55 = arith.constant 0 : index
    %193 = vector.load %arg4[%c8, %c0_55] : memref<18x32xf32, #tpu.memory_space<vmem>>, vector<2x32xf32>
    tpu.vector_store %arg4[%c8, %c0_55], %192 {strides = array<i32>} : memref<18x32xf32, #tpu.memory_space<vmem>>, vector<2x32xf32>,
    %194 = vector.extract_strided_slice %13 {offsets = [10, 0], sizes = [2, 96], strides = [1, 1]} : vector<16x96xf32> to vector<2x96xf32>
    %cst_56 = arith.constant dense<0.000000e+00> : vector<2x96xf32>
    %195 = tpu.matmul %192, %14, %cst_56 {dimension_numbers = #tpu.dot_dimension_numbers<[1], [0], [0], [1], [0, 0, 1, 1], [], []>} : vector<2x32xf32>, vector<32x96xf32>, vector<2x96xf32> -> vector<2x96xf32>
    %196 = vector.extract_strided_slice %194 {offsets = [0, 0], sizes = [2, 32], strides = [1, 1]} : vector<2x96xf32> to vector<2x32xf32>
    %197 = vector.extract_strided_slice %195 {offsets = [0, 0], sizes = [2, 32], strides = [1, 1]} : vector<2x96xf32> to vector<2x32xf32>
    %198 = arith.addf %196, %197 : vector<2x32xf32>
    %cst_57 = arith.constant 5.000000e-01 : f32
    %199 = vector.broadcast %cst_57 : f32 to vector<2x32xf32>
    %200 = arith.mulf %199, %198 : vector<2x32xf32>
    %201 = math.tanh %200 : vector<2x32xf32>
    %cst_58 = arith.constant 5.000000e-01 : f32
    %202 = vector.broadcast %cst_58 : f32 to vector<2x32xf32>
    %203 = arith.mulf %202, %201 : vector<2x32xf32>
    %cst_59 = arith.constant 5.000000e-01 : f32
    %204 = vector.broadcast %cst_59 : f32 to vector<2x32xf32>
    %205 = arith.addf %203, %204 : vector<2x32xf32>
    %206 = vector.extract_strided_slice %194 {offsets = [0, 32], sizes = [2, 32], strides = [1, 1]} : vector<2x96xf32> to vector<2x32xf32>
    %207 = vector.extract_strided_slice %195 {offsets = [0, 32], sizes = [2, 32], strides = [1, 1]} : vector<2x96xf32> to vector<2x32xf32>
    %208 = arith.addf %206, %207 : vector<2x32xf32>
    %cst_60 = arith.constant 5.000000e-01 : f32
    %209 = vector.broadcast %cst_60 : f32 to vector<2x32xf32>
    %210 = arith.mulf %209, %208 : vector<2x32xf32>
    %211 = math.tanh %210 : vector<2x32xf32>
    %cst_61 = arith.constant 5.000000e-01 : f32
    %212 = vector.broadcast %cst_61 : f32 to vector<2x32xf32>
    %213 = arith.mulf %212, %211 : vector<2x32xf32>
    %cst_62 = arith.constant 5.000000e-01 : f32
    %214 = vector.broadcast %cst_62 : f32 to vector<2x32xf32>
    %215 = arith.addf %213, %214 : vector<2x32xf32>
    %216 = vector.extract_strided_slice %194 {offsets = [0, 64], sizes = [2, 32], strides = [1, 1]} : vector<2x96xf32> to vector<2x32xf32>
    %217 = vector.extract_strided_slice %195 {offsets = [0, 64], sizes = [2, 32], strides = [1, 1]} : vector<2x96xf32> to vector<2x32xf32>
    %218 = vector.broadcast %15 : vector<1x32xf32> to vector<2x32xf32>
    %219 = arith.addf %217, %218 : vector<2x32xf32>
    %220 = arith.mulf %205, %219 : vector<2x32xf32>
    %221 = arith.addf %216, %220 : vector<2x32xf32>
    %222 = math.tanh %221 : vector<2x32xf32>
    %cst_63 = arith.constant 1.000000e+00 : f32
    %223 = vector.broadcast %cst_63 : f32 to vector<2x32xf32>
    %224 = arith.subf %223, %215 : vector<2x32xf32>
    %225 = arith.mulf %224, %222 : vector<2x32xf32>
    %226 = arith.mulf %215, %192 : vector<2x32xf32>
    %227 = arith.addf %225, %226 : vector<2x32xf32>
    %c10 = arith.constant 10 : index
    %c0_64 = arith.constant 0 : index
    %228 = vector.load %arg4[%c10, %c0_64] : memref<18x32xf32, #tpu.memory_space<vmem>>, vector<2x32xf32>
    tpu.vector_store %arg4[%c10, %c0_64], %227 {strides = array<i32>} : memref<18x32xf32, #tpu.memory_space<vmem>>, vector<2x32xf32>,
    %229 = vector.extract_strided_slice %13 {offsets = [12, 0], sizes = [2, 96], strides = [1, 1]} : vector<16x96xf32> to vector<2x96xf32>
    %cst_65 = arith.constant dense<0.000000e+00> : vector<2x96xf32>
    %230 = tpu.matmul %227, %14, %cst_65 {dimension_numbers = #tpu.dot_dimension_numbers<[1], [0], [0], [1], [0, 0, 1, 1], [], []>} : vector<2x32xf32>, vector<32x96xf32>, vector<2x96xf32> -> vector<2x96xf32>
    %231 = vector.extract_strided_slice %229 {offsets = [0, 0], sizes = [2, 32], strides = [1, 1]} : vector<2x96xf32> to vector<2x32xf32>
    %232 = vector.extract_strided_slice %230 {offsets = [0, 0], sizes = [2, 32], strides = [1, 1]} : vector<2x96xf32> to vector<2x32xf32>
    %233 = arith.addf %231, %232 : vector<2x32xf32>
    %cst_66 = arith.constant 5.000000e-01 : f32
    %234 = vector.broadcast %cst_66 : f32 to vector<2x32xf32>
    %235 = arith.mulf %234, %233 : vector<2x32xf32>
    %236 = math.tanh %235 : vector<2x32xf32>
    %cst_67 = arith.constant 5.000000e-01 : f32
    %237 = vector.broadcast %cst_67 : f32 to vector<2x32xf32>
    %238 = arith.mulf %237, %236 : vector<2x32xf32>
    %cst_68 = arith.constant 5.000000e-01 : f32
    %239 = vector.broadcast %cst_68 : f32 to vector<2x32xf32>
    %240 = arith.addf %238, %239 : vector<2x32xf32>
    %241 = vector.extract_strided_slice %229 {offsets = [0, 32], sizes = [2, 32], strides = [1, 1]} : vector<2x96xf32> to vector<2x32xf32>
    %242 = vector.extract_strided_slice %230 {offsets = [0, 32], sizes = [2, 32], strides = [1, 1]} : vector<2x96xf32> to vector<2x32xf32>
    %243 = arith.addf %241, %242 : vector<2x32xf32>
    %cst_69 = arith.constant 5.000000e-01 : f32
    %244 = vector.broadcast %cst_69 : f32 to vector<2x32xf32>
    %245 = arith.mulf %244, %243 : vector<2x32xf32>
    %246 = math.tanh %245 : vector<2x32xf32>
    %cst_70 = arith.constant 5.000000e-01 : f32
    %247 = vector.broadcast %cst_70 : f32 to vector<2x32xf32>
    %248 = arith.mulf %247, %246 : vector<2x32xf32>
    %cst_71 = arith.constant 5.000000e-01 : f32
    %249 = vector.broadcast %cst_71 : f32 to vector<2x32xf32>
    %250 = arith.addf %248, %249 : vector<2x32xf32>
    %251 = vector.extract_strided_slice %229 {offsets = [0, 64], sizes = [2, 32], strides = [1, 1]} : vector<2x96xf32> to vector<2x32xf32>
    %252 = vector.extract_strided_slice %230 {offsets = [0, 64], sizes = [2, 32], strides = [1, 1]} : vector<2x96xf32> to vector<2x32xf32>
    %253 = vector.broadcast %15 : vector<1x32xf32> to vector<2x32xf32>
    %254 = arith.addf %252, %253 : vector<2x32xf32>
    %255 = arith.mulf %240, %254 : vector<2x32xf32>
    %256 = arith.addf %251, %255 : vector<2x32xf32>
    %257 = math.tanh %256 : vector<2x32xf32>
    %cst_72 = arith.constant 1.000000e+00 : f32
    %258 = vector.broadcast %cst_72 : f32 to vector<2x32xf32>
    %259 = arith.subf %258, %250 : vector<2x32xf32>
    %260 = arith.mulf %259, %257 : vector<2x32xf32>
    %261 = arith.mulf %250, %227 : vector<2x32xf32>
    %262 = arith.addf %260, %261 : vector<2x32xf32>
    %c12 = arith.constant 12 : index
    %c0_73 = arith.constant 0 : index
    %263 = vector.load %arg4[%c12, %c0_73] : memref<18x32xf32, #tpu.memory_space<vmem>>, vector<2x32xf32>
    tpu.vector_store %arg4[%c12, %c0_73], %262 {strides = array<i32>} : memref<18x32xf32, #tpu.memory_space<vmem>>, vector<2x32xf32>,
    %264 = vector.extract_strided_slice %13 {offsets = [14, 0], sizes = [2, 96], strides = [1, 1]} : vector<16x96xf32> to vector<2x96xf32>
    %cst_74 = arith.constant dense<0.000000e+00> : vector<2x96xf32>
    %265 = tpu.matmul %262, %14, %cst_74 {dimension_numbers = #tpu.dot_dimension_numbers<[1], [0], [0], [1], [0, 0, 1, 1], [], []>} : vector<2x32xf32>, vector<32x96xf32>, vector<2x96xf32> -> vector<2x96xf32>
    %266 = vector.extract_strided_slice %264 {offsets = [0, 0], sizes = [2, 32], strides = [1, 1]} : vector<2x96xf32> to vector<2x32xf32>
    %267 = vector.extract_strided_slice %265 {offsets = [0, 0], sizes = [2, 32], strides = [1, 1]} : vector<2x96xf32> to vector<2x32xf32>
    %268 = arith.addf %266, %267 : vector<2x32xf32>
    %cst_75 = arith.constant 5.000000e-01 : f32
    %269 = vector.broadcast %cst_75 : f32 to vector<2x32xf32>
    %270 = arith.mulf %269, %268 : vector<2x32xf32>
    %271 = math.tanh %270 : vector<2x32xf32>
    %cst_76 = arith.constant 5.000000e-01 : f32
    %272 = vector.broadcast %cst_76 : f32 to vector<2x32xf32>
    %273 = arith.mulf %272, %271 : vector<2x32xf32>
    %cst_77 = arith.constant 5.000000e-01 : f32
    %274 = vector.broadcast %cst_77 : f32 to vector<2x32xf32>
    %275 = arith.addf %273, %274 : vector<2x32xf32>
    %276 = vector.extract_strided_slice %264 {offsets = [0, 32], sizes = [2, 32], strides = [1, 1]} : vector<2x96xf32> to vector<2x32xf32>
    %277 = vector.extract_strided_slice %265 {offsets = [0, 32], sizes = [2, 32], strides = [1, 1]} : vector<2x96xf32> to vector<2x32xf32>
    %278 = arith.addf %276, %277 : vector<2x32xf32>
    %cst_78 = arith.constant 5.000000e-01 : f32
    %279 = vector.broadcast %cst_78 : f32 to vector<2x32xf32>
    %280 = arith.mulf %279, %278 : vector<2x32xf32>
    %281 = math.tanh %280 : vector<2x32xf32>
    %cst_79 = arith.constant 5.000000e-01 : f32
    %282 = vector.broadcast %cst_79 : f32 to vector<2x32xf32>
    %283 = arith.mulf %282, %281 : vector<2x32xf32>
    %cst_80 = arith.constant 5.000000e-01 : f32
    %284 = vector.broadcast %cst_80 : f32 to vector<2x32xf32>
    %285 = arith.addf %283, %284 : vector<2x32xf32>
    %286 = vector.extract_strided_slice %264 {offsets = [0, 64], sizes = [2, 32], strides = [1, 1]} : vector<2x96xf32> to vector<2x32xf32>
    %287 = vector.extract_strided_slice %265 {offsets = [0, 64], sizes = [2, 32], strides = [1, 1]} : vector<2x96xf32> to vector<2x32xf32>
    %288 = vector.broadcast %15 : vector<1x32xf32> to vector<2x32xf32>
    %289 = arith.addf %287, %288 : vector<2x32xf32>
    %290 = arith.mulf %275, %289 : vector<2x32xf32>
    %291 = arith.addf %286, %290 : vector<2x32xf32>
    %292 = math.tanh %291 : vector<2x32xf32>
    %cst_81 = arith.constant 1.000000e+00 : f32
    %293 = vector.broadcast %cst_81 : f32 to vector<2x32xf32>
    %294 = arith.subf %293, %285 : vector<2x32xf32>
    %295 = arith.mulf %294, %292 : vector<2x32xf32>
    %296 = arith.mulf %285, %262 : vector<2x32xf32>
    %297 = arith.addf %295, %296 : vector<2x32xf32>
    %c14 = arith.constant 14 : index
    %c0_82 = arith.constant 0 : index
    %298 = vector.load %arg4[%c14, %c0_82] : memref<18x32xf32, #tpu.memory_space<vmem>>, vector<2x32xf32>
    tpu.vector_store %arg4[%c14, %c0_82], %297 {strides = array<i32>} : memref<18x32xf32, #tpu.memory_space<vmem>>, vector<2x32xf32>,
    %c0_83 = arith.constant 0 : index
    %c0_84 = arith.constant 0 : index
    %299 = vector.load %arg4[%c0_83, %c0_84] : memref<18x32xf32, #tpu.memory_space<vmem>>, vector<18x32xf32>
    %300 = vector.extract_strided_slice %299 {offsets = [0, 0], sizes = [18, 16], strides = [1, 1]} : vector<18x32xf32> to vector<18x16xf32>
    %c80 = arith.constant 80 : index
    %c0_85 = arith.constant 0 : index
    %301 = vector.load %arg1[%c80, %c0_85] : memref<192x96xf32, #tpu.memory_space<vmem>>, vector<18x18xf32>
    %302 = vector.extract_strided_slice %299 {offsets = [0, 16], sizes = [18, 16], strides = [1, 1]} : vector<18x32xf32> to vector<18x16xf32>
    %cst_86 = arith.constant dense<0.000000e+00> : vector<18x16xf32>
    %303 = tpu.matmul %301, %302, %cst_86 {dimension_numbers = #tpu.dot_dimension_numbers<[1], [0], [0], [1], [0, 0, 1, 1], [], []>} : vector<18x18xf32>, vector<18x16xf32>, vector<18x16xf32> -> vector<18x16xf32>
    %c104 = arith.constant 104 : index
    %c0_87 = arith.constant 0 : index
    %304 = vector.load %arg1[%c104, %c0_87] : memref<192x96xf32, #tpu.memory_space<vmem>>, vector<64x48xf32>
    %305 = vector.extract_strided_slice %304 {offsets = [0, 0], sizes = [16, 48], strides = [1, 1]} : vector<64x48xf32> to vector<16x48xf32>
    %cst_88 = arith.constant dense<0.000000e+00> : vector<18x48xf32>
    %306 = tpu.matmul %300, %305, %cst_88 {dimension_numbers = #tpu.dot_dimension_numbers<[1], [0], [0], [1], [0, 0, 1, 1], [], []>} : vector<18x16xf32>, vector<16x48xf32>, vector<18x48xf32> -> vector<18x48xf32>
    %307 = vector.extract_strided_slice %304 {offsets = [16, 0], sizes = [16, 48], strides = [1, 1]} : vector<64x48xf32> to vector<16x48xf32>
    %cst_89 = arith.constant dense<0.000000e+00> : vector<18x48xf32>
    %308 = tpu.matmul %303, %307, %cst_89 {dimension_numbers = #tpu.dot_dimension_numbers<[1], [0], [0], [1], [0, 0, 1, 1], [], []>} : vector<18x16xf32>, vector<16x48xf32>, vector<18x48xf32> -> vector<18x48xf32>
    %309 = arith.addf %306, %308 : vector<18x48xf32>
    %c0_90 = arith.constant 0 : index
    %c0_91 = arith.constant 0 : index
    %310 = vector.load %arg2[%c0_90, %c0_91] : memref<18x32xf32, #tpu.memory_space<vmem>>, vector<18x32xf32>
    %311 = vector.extract_strided_slice %304 {offsets = [32, 0], sizes = [32, 48], strides = [1, 1]} : vector<64x48xf32> to vector<32x48xf32>
    %cst_92 = arith.constant dense<0.000000e+00> : vector<18x48xf32>
    %312 = tpu.matmul %310, %311, %cst_92 {dimension_numbers = #tpu.dot_dimension_numbers<[1], [0], [0], [1], [0, 0, 1, 1], [], []>} : vector<18x32xf32>, vector<32x48xf32>, vector<18x48xf32> -> vector<18x48xf32>
    %313 = arith.addf %309, %312 : vector<18x48xf32>
    %314 = vector.extract_strided_slice %313 {offsets = [0, 0], sizes = [14, 16], strides = [1, 1]} : vector<18x48xf32> to vector<14x16xf32>
    %315 = vector.extract_strided_slice %313 {offsets = [2, 16], sizes = [14, 16], strides = [1, 1]} : vector<18x48xf32> to vector<14x16xf32>
    %316 = arith.addf %314, %315 : vector<14x16xf32>
    %317 = vector.extract_strided_slice %313 {offsets = [4, 32], sizes = [14, 16], strides = [1, 1]} : vector<18x48xf32> to vector<14x16xf32>
    %318 = arith.addf %316, %317 : vector<14x16xf32>
    %319 = tpu.iota {dimensions = array<i32: 1>} : vector<2x16xi32>
    %c8_i32 = arith.constant 8 : i32
    %c0_i32 = arith.constant 0 : i32
    %320 = arith.cmpi eq, %c8_i32, %c0_i32 : i32
    %c1_i32 = arith.constant 1 : i32
    %321 = arith.select %320, %c1_i32, %c8_i32 : i32
    %322 = vector.broadcast %321 : i32 to vector<2x16xi32>
    %323 = arith.remsi %319, %322 : vector<2x16xi32>
    %c0_i32_93 = arith.constant 0 : i32
    %324 = vector.broadcast %c0_i32_93 : i32 to vector<2x16xi32>
    %325 = arith.cmpi ne, %323, %324 : vector<2x16xi32>
    %c0_i32_94 = arith.constant 0 : i32
    %326 = vector.broadcast %c0_i32_94 : i32 to vector<2x16xi32>
    %327 = arith.cmpi slt, %323, %326 : vector<2x16xi32>
    %c0_i32_95 = arith.constant 0 : i32
    %328 = arith.cmpi slt, %321, %c0_i32_95 : i32
    %329 = vector.broadcast %328 : i1 to vector<2x16xi1>
    %330 = vector.broadcast %329 : vector<2x16xi1> to vector<2x16xi1>
    %331 = arith.xori %327, %330 : vector<2x16xi1>
    %332 = arith.andi %331, %325 : vector<2x16xi1>
    %333 = vector.broadcast %321 : i32 to vector<2x16xi32>
    %334 = arith.addi %323, %333 : vector<2x16xi32>
    %335 = arith.select %332, %334, %323 : vector<2x16xi1>, vector<2x16xi32>
    %c4_i32 = arith.constant 4 : i32
    %336 = vector.broadcast %c4_i32 : i32 to vector<2x16xi32>
    %337 = arith.cmpi slt, %335, %336 : vector<2x16xi32>
    %338 = vector.extract_strided_slice %318 {offsets = [0, 0], sizes = [2, 16], strides = [1, 1]} : vector<14x16xf32> to vector<2x16xf32>
    %339 = vector.extract_strided_slice %318 {offsets = [2, 0], sizes = [2, 16], strides = [1, 1]} : vector<14x16xf32> to vector<2x16xf32>
    %340 = vector.extract_strided_slice %318 {offsets = [4, 0], sizes = [2, 16], strides = [1, 1]} : vector<14x16xf32> to vector<2x16xf32>
    %341 = vector.extract_strided_slice %318 {offsets = [6, 0], sizes = [2, 16], strides = [1, 1]} : vector<14x16xf32> to vector<2x16xf32>
    %342 = vector.extract_strided_slice %318 {offsets = [8, 0], sizes = [2, 16], strides = [1, 1]} : vector<14x16xf32> to vector<2x16xf32>
    %343 = vector.extract_strided_slice %318 {offsets = [10, 0], sizes = [2, 16], strides = [1, 1]} : vector<14x16xf32> to vector<2x16xf32>
    %344 = vector.extract_strided_slice %318 {offsets = [12, 0], sizes = [2, 16], strides = [1, 1]} : vector<14x16xf32> to vector<2x16xf32>
    %cst_96 = arith.constant 0xFF800000 : f32
    %345 = vector.broadcast %cst_96 : f32 to vector<2x16xf32>
    %346 = arith.select %337, %344, %345 : vector<2x16xi1>, vector<2x16xf32>
    %347 = arith.maximumf %338, %339 : vector<2x16xf32>
    %348 = arith.maximumf %340, %341 : vector<2x16xf32>
    %349 = arith.maximumf %342, %343 : vector<2x16xf32>
    %350 = arith.maximumf %347, %348 : vector<2x16xf32>
    %351 = arith.maximumf %349, %346 : vector<2x16xf32>
    %352 = arith.maximumf %350, %351 : vector<2x16xf32>
    %c184_97 = arith.constant 184 : index
    %c32 = arith.constant 32 : index
    %353 = vector.load %arg1[%c184_97, %c32] : memref<192x96xf32, #tpu.memory_space<vmem>>, vector<1x16xf32>
    %354 = vector.broadcast %353 : vector<1x16xf32> to vector<2x16xf32>
    %355 = arith.addf %352, %354 : vector<2x16xf32>
    %cst_98 = arith.constant 0.000000e+00 : f32
    %356 = vector.broadcast %cst_98 : f32 to vector<2x16xf32>
    %357 = arith.maximumf %355, %356 : vector<2x16xf32>
    %c168 = arith.constant 168 : index
    %c0_99 = arith.constant 0 : index
    %358 = vector.load %arg1[%c168, %c0_99] : memref<192x96xf32, #tpu.memory_space<vmem>>, vector<16x3xf32>
    %c184_100 = arith.constant 184 : index
    %c48_101 = arith.constant 48 : index
    %359 = vector.load %arg1[%c184_100, %c48_101] : memref<192x96xf32, #tpu.memory_space<vmem>>, vector<1x3xf32>
    %cst_102 = arith.constant dense<0.000000e+00> : vector<2x3xf32>
    %360 = tpu.matmul %357, %358, %cst_102 {dimension_numbers = #tpu.dot_dimension_numbers<[1], [0], [0], [1], [0, 0, 1, 1], [], []>} : vector<2x16xf32>, vector<16x3xf32>, vector<2x3xf32> -> vector<2x3xf32>
    %361 = vector.broadcast %359 : vector<1x3xf32> to vector<2x3xf32>
    %362 = arith.addf %360, %361 : vector<2x3xf32>
    %cst_103 = arith.constant dense<0xFF800000> : vector<2xf32>
    %363 = vector.multi_reduction <maximumf>, %362, %cst_103 [1] : vector<2x3xf32> to vector<2xf32>
    %364 = vector.shape_cast %363 : vector<2xf32> to vector<2x1xf32>
    %365 = vector.broadcast %364 : vector<2x1xf32> to vector<2x3xf32>
    %366 = arith.subf %362, %365 : vector<2x3xf32>
    %367 = math.exp %366 : vector<2x3xf32>
    %cst_104 = arith.constant dense<0.000000e+00> : vector<2xf32>
    %368 = vector.multi_reduction <add>, %367, %cst_104 [1] : vector<2x3xf32> to vector<2xf32>
    %369 = vector.shape_cast %368 : vector<2xf32> to vector<2x1xf32>
    %370 = tpu.reciprocal %369 {approx = true} : vector<2x1xf32> -> vector<2x1xf32>
    %371 = vector.broadcast %370 : vector<2x1xf32> to vector<2x3xf32>
    %372 = arith.mulf %367, %371 : vector<2x3xf32>
    %c0_105 = arith.constant 0 : index
    %c0_106 = arith.constant 0 : index
    %373 = vector.load %arg3[%c0_105, %c0_106] : memref<2x3xf32, #tpu.memory_space<vmem>>, vector<2x3xf32>
    tpu.vector_store %arg3[%c0_105, %c0_106], %372 {strides = array<i32>} : memref<2x3xf32, #tpu.memory_space<vmem>>, vector<2x3xf32>,
    return
  }
}

</mosaic_0001>

<bundles_post_ra>
// kernel: forward_pallas.1
= control target key start
LH: loop header
LB: loop body
LE: loop exit
PB: predicated region body
PF: predicated region fallthrough
CT: control target
= control target key end

     0   :  { %v1918_v2 = vmov 0   ;;  %v1919_v5 = vmov 0.0   ;;  %vm1920_vm0 = vmmov 0   ;;  %s2300_s0 = inlined_call_operand.vmem [shape: s32[16,2], index: 0, kind: input, shape index: {}]   ;;  %s2301_s1 = inlined_call_operand.vmem [shape: f32[192,96], index: 1, kind: input, shape index: {}]   ;;  %s2302_s2 = inlined_call_operand.vmem [shape: f32[18,32], index: 2, kind: input, shape index: {}]   ;;  %s2303_s3 = inlined_call_operand.hbm [shape: f32[2,3], index: 3, kind: output, shape index: {}]  }
   0x1   :  { %v16_v0 = vld [vmem:[%s2300_s0 + $0x8] sm:$0xff]  ;;  %v15_v1 = vld [vmem:[%s2300_s0] sm:$0xff]  ;;  %1858 = vset.pattern.permute.xlu1 %v1918_v2  ;;  %1856 = vset.pattern.permute.xlu0 %v1918_v2 }
   0x2   :  { %v1956_v3 = vld [vmem:[%s2301_s1 + $0x48] sm:$0xff]  ;;  %23 = vperm.xlu1 %1858, %v16_v0   ;;  %20 = vperm.xlu0 %1856, %v15_v1  }
   0x3   :  { %v44_v4 = vld [vmem:[%s2301_s1 + $0x28] sm:$0xff]  ;;  %1694 = vmatprep.subr.mxu1 %v1919_v5  ;;  %1702 = vmatprep.mubr.msk.f32.mxu1 %vm1920_vm0, %v1919_v5 }
   0x4   :  { %1695 = vmatpush3.msra.mxu1 %v1956_v3  ;;  %1679 = vmatprep.subr.mxu0 %v44_v4 }
   0x5   :  { %8 = vsyncpa [#allocation4], 0  ;;  %1696 = vmatprep.subr.mxu1 %v1919_v5  ;;  %v1969_v6 = vld [vmem:[%s2301_s1 + $0x40] sm:$0xff]  ;;  %1680 = vmatpush3.msra.mxu0 %v44_v4  ;;  %v1921_v8 = vmov 1   ;;  %v1977_v9 = vld [vmem:[%s2301_s1 + $0x38] sm:$0xff]  ;;  %s1922_s6 = smov 64   ;;  %v17_v16 = vlaneseq }
   0x6   :  { %v43_v7 = vld [vmem:[%s2301_s1 + $0x20] sm:$0xff]  ;;  %1859 = vset.pattern.permute.xlu1 %v1921_v8  ;;  %1857 = vset.pattern.permute.xlu0 %v1921_v8  ;;  %v42_v10 = vld [vmem:[%s2301_s1 + $0x18] sm:$0xff]  ;;  %v1992_v12 = vld [vmem:[%s2301_s1 + $0x30] sm:$0xff]  ;;  %vm45_vm6 = vcmask 392192   ;;  %vm132_vm8 = vcmask 254976   ;;  %s1923_s11 = smov 96  }
   0x7   :  { %31 = vperm.xlu1 %1859, %v16_v0   ;;  %28 = vperm.xlu0 %1857, %v15_v1   ;;  %v1986_v11 = vld [vmem:[%s2301_s1 + $0xb8] ss:$0 sm:$0xff]  ;;  %v41_v13 = vld [vmem:[%s2301_s1 + $0x10] sm:$0xff]  ;;  %v40_v14 = vld [vmem:[%s2301_s1 + $0x8] sm:$0xff]  ;;  %v2021_v19 = vand.u32 127, %v17_v16  ;;  %vm134_vm9 = vcmask 261120  }
   0x8   :  { %1697 = vmatpush3.msra.mxu1 %v1969_v6  ;;  %1681 = vmatprep.subr.mxu0 %v43_v7  ;;  %v39_v15 = vld [vmem:[%s2301_s1] sm:$0xff]  ;;  %133 = vst.msk [vmem:[#allocation2 + $0x10] sm:$0x3] %vm132_vm8, %v1919_v5  ;;  %vm353_vm10 = vcmask 257026   ;;  %vm465_vm11 = vcmask 259076   ;;  %vm577_vm12 = vcmask 261126  }
   0x9   :  { %1698 = vmatprep.subr.mxu1 %v1919_v5  ;;  %1682 = vmatpush3.msra.mxu0 %v43_v7  ;;  %s1924_s12 = smov 112   ;;  %vm1042_vm13 = vcmask 1041408   ;;  %vm1032_vm14 = vcmask 146432   ;;  %vm1133_vm15 = vcmask 130048  }
   0xa   :  { %1699 = vmatpush3.msra.mxu1 %v1977_v9  ;;  %1683 = vmatprep.subr.mxu0 %v42_v10 }
   0xb   :  { %1700 = vmatprep.subr.mxu1 %v1919_v5  ;;  %218 = vrot.lane.b32.xlu1 %v1986_v11, %s1922_s6 }
   0xc   :  { %1701 = vmatpush3.msra.mxu1 %v1992_v12  ;;  %1684 = vmatpush3.msra.mxu0 %v42_v10 }
   0xd   :  { %1703 = vmatmul.mubr.f32.vlgmr.msra.gmra.mxu1 %v1919_v5  ;;  %1685 = vmatprep.subr.mxu0 %v41_v13 }
   0xe   :  { %1686 = vmatpush3.msra.mxu0 %v41_v13  ;;  %1705 = vmatprep.subr.mxu1 %v1919_v5 }
   0xf   :  { %1687 = vmatprep.subr.mxu0 %v40_v14  ;;  %1706 = vmatpush3.msra.mxu1 %v1956_v3 }
  0x10   :  { %1688 = vmatpush3.msra.mxu0 %v40_v14  ;;  %1707 = vmatprep.subr.mxu1 %v1919_v5 }
  0x11   :  { %1689 = vmatprep.subr.mxu0 %v39_v15  ;;  %1708 = vmatpush3.msra.mxu1 %v1969_v6 }
  0x12   :  { %1690 = vmatpush3.msra.mxu0 %v39_v15  ;;  %1709 = vmatprep.subr.mxu1 %v1919_v5 }
  0x13   :  { %1710 = vmatpush3.msra.mxu1 %v1977_v9  ;;  %1713 = vmatprep.mubr.msk.f32.mxu1 %vm1920_vm0, %v1919_v5 }
  0x14   :  { %1711 = vmatprep.subr.mxu1 %v1919_v5  ;;  %1716 = vmatprep.subr.mxu0 %v1919_v5 }
  0x15   :  { %1712 = vmatpush3.msra.mxu1 %v1992_v12 }
  0x16   :  { %1727 = vmatprep.subr.mxu1 %v1919_v5 }
  0x7d   :  { %v21_v17 = vpop.permute.xlu0 %20  ;;  %v24_v18 = vpop.permute.xlu1 %23 }
  0x7e   :  { %vm26_vm1 = vcmp.eq.s32.totalorder %v2021_v19, %v24_v18  ;;  %vm25_vm4 = vcmp.eq.s32.totalorder %v2021_v19, %v21_v17 }
  0x82   :  { %v32_v20 = vpop.permute.xlu1 %31  ;;  %v29_v21 = vpop.permute.xlu0 %28 }
  0x83   :  { %vm34_vm2 = vcmp.eq.s32.totalorder %v2021_v19, %v32_v20  ;;  %vm33_vm3 = vcmp.eq.s32.totalorder %v2021_v19, %v29_v21 }
  0x84   :  { %vm36_vm5 = vmor %vm26_vm1, %vm34_vm2  ;;  %vm1419_vm1 = vcmask 1043456  }
  0x85   :  { %v38_v22 = vsel %vm36_vm5, 1.0, %v1919_v5  ;;  %vm35_vm7 = vmor %vm25_vm4, %vm33_vm3  ;;  %vm1553_vm3 = vcmask 17408  }
  0x86   :  { %v37_v23 = vsel %vm35_vm7, 1.0, %v1919_v5  ;;  %v2039_v24 = vpop.permute.xlu1 %218 }
  0x87   :  { %1691 = vmatprep.mubr.msk.f32.mxu0 %vm45_vm6, %v37_v23 }
  0x88   :  { %1692 = vmatmul.mubr.msk.f32.vlgmr.msra.gmra.mxu0 %vm45_vm6, %v38_v22 }
  0x89   :  { %1717 = vmatpush3.msra.mxu0 %v1956_v3  ;;  %1724 = vmatprep.mubr.msk.f32.mxu0 %vm1920_vm0, %v1919_v5 }
  0x8a   :  { %1718 = vmatprep.subr.mxu0 %v1919_v5 }
  0x8b   :  { %1719 = vmatpush3.msra.mxu0 %v1969_v6 }
  0x8c   :  { %1720 = vmatprep.subr.mxu0 %v1919_v5 }
  0x8d   :  { %1721 = vmatpush3.msra.mxu0 %v1977_v9 }
  0x8e   :  { %1722 = vmatprep.subr.mxu0 %v1919_v5 }
  0x8f   :  { %1723 = vmatpush3.msra.mxu0 %v1992_v12 }
  0x90   :  { %1738 = vmatprep.subr.mxu0 %v1919_v5 }
  0xcd   :  { %v204_v25 = vpop.f32.mrf.mxu1 }
  0xce   :  { %v221_v26 = vadd.f32 %v2039_v24, %v204_v25 }
  0xcf   :  { %v1704_v27 = vpop.f32.mrf.mxu1 }
  0xd0   :  { %223 = vrot.lane.b32.xlu0 %v221_v26, %s1922_s6 }
 0x142   :  { %v224_v34 = vpop.permute.xlu0 %223 }
 0x148   :  { %v2043_v28 = vpop.f32.mrf.mxu0 }
 0x14a   :  { %v2045_v29 = vpop.f32.mrf.mxu0 }
 0x14b   :  { %v208_v30 = vadd.f32 %v204_v25, %v2045_v29 }
 0x14d   :  { %v209_v31 = vmul.f32 0.5, %v208_v30 }
 0x14f   :  { %1860 = vtanh.f32 %v209_v31 }
 0x15c   :  { %v1861_v32 = vpop.eup %1860 }
 0x15d   :  { %v211_v33 = vmul.f32 0.5, %v1861_v32 }
 0x15f   :  { %v212_v35 = vadd.f32 0.5, %v211_v33 }
 0x161   :  { %v226_v36 = vmul.f32 %v224_v34, %v212_v35  ;;  %v233_v40 = vsub.f32 1.0, %v212_v35  ;;  %v239_v42 = vmul.f32 0.0, %v212_v35 }
 0x163   :  { %228 = vrot.lane.b32.xlu1 %v226_v36, %s1922_s6 }
 0x1d5   :  { %v229_v37 = vpop.permute.xlu1 %228 }
 0x1d6   :  { %v231_v38 = vadd.f32 %v229_v37, %v2045_v29 }
 0x1d8   :  { %1862 = vtanh.f32 %v231_v38 }
 0x1e5   :  { %v1863_v39 = vpop.eup %1862 }
 0x1e6   :  { %235 = vrot.lane.b32.xlu0 %v1863_v39, %s1923_s11 }
 0x258   :  { %v236_v41 = vpop.permute.xlu0 %235 }
 0x259   :  { %v238_v43 = vmul.f32 %v236_v41, %v233_v40 }
 0x25b   :  { %v240_v44 = vadd.f32 %v239_v42, %v238_v43 }
 0x25d   :  { %242 = vrot.lane.b32.xlu1 %v240_v44, %s1923_s11  ;;  %v345_v61 = vrot.slane %v240_v44, 6 }
 0x2cf   :  { %v243_v45 = vpop.permute.xlu1 %242 }
 0x2d0   :  { %245 = vst.msk [vmem:[#allocation2] sm:$0x3] %vm132_vm8, %v243_v45  ;;  %1714 = vmatmul.mubr.msk.f32.vlgmr.msra.gmra.mxu1 %vm134_vm9, %v243_v45 }
 0x2d1   :  { %1728 = vmatpush3.msra.mxu1 %v1956_v3  ;;  %1735 = vmatprep.mubr.msk.f32.mxu1 %vm1920_vm0, %v1919_v5 }
 0x2d2   :  { %1729 = vmatprep.subr.mxu1 %v1919_v5 }
 0x2d3   :  { %1730 = vmatpush3.msra.mxu1 %v1969_v6 }
 0x2d4   :  { %1731 = vmatprep.subr.mxu1 %v1919_v5 }
 0x2d5   :  { %1732 = vmatpush3.msra.mxu1 %v1977_v9 }
 0x2d6   :  { %1733 = vmatprep.subr.mxu1 %v1919_v5 }
 0x2d7   :  { %1734 = vmatpush3.msra.mxu1 %v1992_v12 }
 0x2d8   :  { %1749 = vmatprep.subr.mxu1 %v1919_v5 }
 0x390   :  { %v314_v46 = vpop.f32.mrf.mxu1 }
 0x391   :  { %v326_v47 = vadd.f32 %v314_v46, %v2039_v24  ;;  %v319_v50 = vrot.slane %v314_v46, 6 }
 0x392   :  { %v1715_v48 = vpop.f32.mrf.mxu1 }
 0x393   :  { %v328_v49 = vrot.slane %v326_v47, 6  ;;  %v321_v51 = vadd.f32 %v319_v50, %v2045_v29 }
 0x395   :  { %329 = vrot.lane.b32.xlu0 %v328_v49, %s1922_s6  ;;  %v322_v52 = vmul.f32 0.5, %v321_v51 }
 0x397   :  { %1864 = vtanh.f32 %v322_v52 }
 0x3a4   :  { %v1865_v53 = vpop.eup %1864 }
 0x3a5   :  { %v324_v54 = vmul.f32 0.5, %v1865_v53 }
 0x3a7   :  { %v325_v55 = vadd.f32 0.5, %v324_v54 }
 0x3a9   :  { %v339_v62 = vsub.f32 1.0, %v325_v55  ;;  %v347_v1 = vmul.f32 %v345_v61, %v325_v55 }
 0x407   :  { %v330_v56 = vpop.permute.xlu0 %329 }
 0x408   :  { %v332_v57 = vmul.f32 %v330_v56, %v325_v55 }
 0x40a   :  { %334 = vrot.lane.b32.xlu1 %v332_v57, %s1922_s6 }
 0x47c   :  { %v335_v58 = vpop.permute.xlu1 %334 }
 0x47d   :  { %v337_v59 = vadd.f32 %v335_v58, %v2045_v29 }
 0x47f   :  { %1866 = vtanh.f32 %v337_v59 }
 0x48c   :  { %v1867_v60 = vpop.eup %1866 }
 0x48d   :  { %341 = vrot.lane.b32.xlu0 %v1867_v60, %s1923_s11 }
 0x4ff   :  { %v342_v63 = vpop.permute.xlu0 %341 }
 0x500   :  { %v344_v0 = vmul.f32 %v342_v63, %v339_v62 }
 0x502   :  { %v2072_v2 = vadd.f32 %v347_v1, %v344_v0 }
 0x504   :  { %v355_v4 = vrot.slane %v2072_v2, 2  ;;  %v457_v31 = vrot.slane %v2072_v2, 6 }
 0x506   :  { %356 = vrot.lane.b32.xlu1 %v355_v4, %s1923_s11 }
 0x578   :  { %v357_v7 = vpop.permute.xlu1 %356 }
 0x579   :  { %1725 = vmatmul.mubr.msk.f32.vlgmr.msra.gmra.mxu0 %vm134_vm9, %v357_v7 }
 0x57a   :  { %1739 = vmatpush3.msra.mxu0 %v1956_v3  ;;  %1746 = vmatprep.mubr.msk.f32.mxu0 %vm1920_vm0, %v1919_v5 }
 0x57b   :  { %1740 = vmatprep.subr.mxu0 %v1919_v5 }
 0x57c   :  { %1741 = vmatpush3.msra.mxu0 %v1969_v6 }
 0x57d   :  { %1742 = vmatprep.subr.mxu0 %v1919_v5 }
 0x57e   :  { %1743 = vmatpush3.msra.mxu0 %v1977_v9 }
 0x57f   :  { %1744 = vmatprep.subr.mxu0 %v1919_v5 }
 0x580   :  { %1745 = vmatpush3.msra.mxu0 %v1992_v12 }
 0x581   :  { %1760 = vmatprep.subr.mxu0 %v1919_v5 }
 0x639   :  { %v426_v8 = vpop.f32.mrf.mxu0 }
 0x63a   :  { %v438_v10 = vadd.f32 %v426_v8, %v2039_v24  ;;  %v431_v15 = vrot.slane %v426_v8, 4 }
 0x63b   :  { %v1726_v13 = vpop.f32.mrf.mxu0 }
 0x63c   :  { %v440_v14 = vrot.slane %v438_v10, 4  ;;  %v433_v16 = vadd.f32 %v431_v15, %v2045_v29 }
 0x63e   :  { %441 = vrot.lane.b32.xlu0 %v440_v14, %s1922_s6  ;;  %v434_v17 = vmul.f32 0.5, %v433_v16 }
 0x640   :  { %1868 = vtanh.f32 %v434_v17 }
 0x64d   :  { %v1869_v18 = vpop.eup %1868 }
 0x64e   :  { %v436_v20 = vmul.f32 0.5, %v1869_v18 }
 0x650   :  { %v437_v21 = vadd.f32 0.5, %v436_v20 }
 0x652   :  { %v451_v30 = vsub.f32 1.0, %v437_v21  ;;  %v459_v33 = vmul.f32 %v457_v31, %v437_v21 }
 0x6b0   :  { %v442_v22 = vpop.permute.xlu0 %441 }
 0x6b1   :  { %v444_v23 = vmul.f32 %v442_v22, %v437_v21 }
 0x6b3   :  { %446 = vrot.lane.b32.xlu1 %v444_v23, %s1922_s6 }
 0x725   :  { %v447_v25 = vpop.permute.xlu1 %446 }
 0x726   :  { %v449_v26 = vadd.f32 %v447_v25, %v2045_v29 }
 0x728   :  { %1870 = vtanh.f32 %v449_v26 }
 0x735   :  { %v1871_v27 = vpop.eup %1870 }
 0x736   :  { %453 = vrot.lane.b32.xlu0 %v1871_v27, %s1923_s11 }
 0x7a8   :  { %v454_v32 = vpop.permute.xlu0 %453 }
 0x7a9   :  { %v456_v34 = vmul.f32 %v454_v32, %v451_v30 }
 0x7ab   :  { %v2094_v35 = vadd.f32 %v459_v33, %v456_v34 }
 0x7ad   :  { %v467_v36 = vrot.slane %v2094_v35, 4  ;;  %v569_v54 = vrot.slane %v2094_v35, 6 }
 0x7af   :  { %468 = vrot.lane.b32.xlu1 %v467_v36, %s1923_s11 }
 0x821   :  { %v469_v37 = vpop.permute.xlu1 %468 }
 0x822   :  { %1736 = vmatmul.mubr.msk.f32.vlgmr.msra.gmra.mxu1 %vm134_vm9, %v469_v37 }
 0x823   :  { %1750 = vmatpush3.msra.mxu1 %v1956_v3  ;;  %1757 = vmatprep.mubr.msk.f32.mxu1 %vm1920_vm0, %v1919_v5 }
 0x824   :  { %1751 = vmatprep.subr.mxu1 %v1919_v5 }
 0x825   :  { %1752 = vmatpush3.msra.mxu1 %v1969_v6 }
 0x826   :  { %1753 = vmatprep.subr.mxu1 %v1919_v5 }
 0x827   :  { %1754 = vmatpush3.msra.mxu1 %v1977_v9 }
 0x828   :  { %1755 = vmatprep.subr.mxu1 %v1919_v5 }
 0x829   :  { %1756 = vmatpush3.msra.mxu1 %v1992_v12 }
 0x82a   :  { %1771 = vmatprep.subr.mxu1 %v1919_v5 }
 0x8e2   :  { %v538_v38 = vpop.f32.mrf.mxu1 }
 0x8e3   :  { %v550_v39 = vadd.f32 %v538_v38, %v2039_v24  ;;  %v543_v42 = vrot.slane %v538_v38, 2 }
 0x8e4   :  { %v1737_v40 = vpop.f32.mrf.mxu1 }
 0x8e5   :  { %v552_v41 = vrot.slane %v550_v39, 2  ;;  %v545_v43 = vadd.f32 %v543_v42, %v2045_v29 }
 0x8e7   :  { %553 = vrot.lane.b32.xlu0 %v552_v41, %s1922_s6  ;;  %v546_v44 = vmul.f32 0.5, %v545_v43 }
 0x8e9   :  { %1872 = vtanh.f32 %v546_v44 }
 0x8f6   :  { %v1873_v45 = vpop.eup %1872 }
 0x8f7   :  { %v548_v46 = vmul.f32 0.5, %v1873_v45 }
 0x8f9   :  { %v549_v47 = vadd.f32 0.5, %v548_v46 }
 0x8fb   :  { %v563_v53 = vsub.f32 1.0, %v549_v47  ;;  %v571_v56 = vmul.f32 %v569_v54, %v549_v47 }
 0x959   :  { %v554_v48 = vpop.permute.xlu0 %553 }
 0x95a   :  { %v556_v49 = vmul.f32 %v554_v48, %v549_v47 }
 0x95c   :  { %558 = vrot.lane.b32.xlu1 %v556_v49, %s1922_s6 }
 0x9ce   :  { %v559_v50 = vpop.permute.xlu1 %558 }
 0x9cf   :  { %v561_v51 = vadd.f32 %v559_v50, %v2045_v29 }
 0x9d1   :  { %1874 = vtanh.f32 %v561_v51 }
 0x9de   :  { %v1875_v52 = vpop.eup %1874 }
 0x9df   :  { %565 = vrot.lane.b32.xlu0 %v1875_v52, %s1923_s11 }
 0xa51   :  { %v566_v55 = vpop.permute.xlu0 %565 }
 0xa52   :  { %v568_v57 = vmul.f32 %v566_v55, %v563_v53 }
 0xa54   :  { %v2116_v58 = vadd.f32 %v571_v56, %v568_v57 }
 0xa56   :  { %v579_v59 = vrot.slane %v2116_v58, 6 }
 0xa58   :  { %580 = vrot.lane.b32.xlu1 %v579_v59, %s1923_s11 }
 0xaca   :  { %v581_v60 = vpop.permute.xlu1 %580 }
 0xacb   :  { %1747 = vmatmul.mubr.msk.f32.vlgmr.msra.gmra.mxu0 %vm134_vm9, %v581_v60 }
 0xacc   :  { %1761 = vmatpush3.msra.mxu0 %v1956_v3  ;;  %1768 = vmatprep.mubr.msk.f32.mxu0 %vm1920_vm0, %v1919_v5 }
 0xacd   :  { %1762 = vmatprep.subr.mxu0 %v1919_v5 }
 0xace   :  { %1763 = vmatpush3.msra.mxu0 %v1969_v6 }
 0xacf   :  { %1764 = vmatprep.subr.mxu0 %v1919_v5 }
 0xad0   :  { %1765 = vmatpush3.msra.mxu0 %v1977_v9 }
 0xad1   :  { %1766 = vmatprep.subr.mxu0 %v1919_v5 }
 0xad2   :  { %1767 = vmatpush3.msra.mxu0 %v1992_v12 }
 0xad3   :  { %1782 = vmatprep.subr.mxu0 %v1919_v5 }
 0xb8b   :  { %v650_v29 = vpop.f32.mrf.mxu0 }
 0xb8c   :  { %v659_v61 = vadd.f32 %v650_v29, %v2039_v24  ;;  %v654_v63 = vadd.f32 %v2043_v28, %v650_v29 }
 0xb8d   :  { %v1748_v62 = vpop.f32.mrf.mxu0 }
 0xb8e   :  { %661 = vrot.lane.b32.xlu0 %v659_v61, %s1922_s6  ;;  %v655_v0 = vmul.f32 0.5, %v654_v63 }
 0xb90   :  { %1876 = vtanh.f32 %v655_v0 }
 0xb9d   :  { %v1877_v1 = vpop.eup %1876 }
 0xb9e   :  { %v657_v4 = vmul.f32 0.5, %v1877_v1 }
 0xba0   :  { %v658_v7 = vadd.f32 0.5, %v657_v4 }
 0xba2   :  { %v671_v16 = vsub.f32 1.0, %v658_v7  ;;  %v678_v18 = vmul.f32 %v658_v7, %v579_v59 }
 0xc00   :  { %v662_v8 = vpop.permute.xlu0 %661 }
 0xc01   :  { %v664_v10 = vmul.f32 %v662_v8, %v658_v7 }
 0xc03   :  { %666 = vrot.lane.b32.xlu1 %v664_v10, %s1922_s6 }
 0xc75   :  { %v667_v13 = vpop.permute.xlu1 %666 }
 0xc76   :  { %v669_v14 = vadd.f32 %v2043_v28, %v667_v13 }
 0xc78   :  { %1878 = vtanh.f32 %v669_v14 }
 0xc85   :  { %v1879_v15 = vpop.eup %1878 }
 0xc86   :  { %673 = vrot.lane.b32.xlu0 %v1879_v15, %s1923_s11 }
 0xcf8   :  { %v674_v17 = vpop.permute.xlu0 %673 }
 0xcf9   :  { %v676_v20 = vmul.f32 %v674_v17, %v671_v16 }
 0xcfb   :  { %v679_v21 = vadd.f32 %v678_v18, %v676_v20 }
 0xcfd   :  { %681 = vrot.lane.b32.xlu1 %v679_v21, %s1923_s11  ;;  %v784_v38 = vrot.slane %v679_v21, 6 }
 0xd6f   :  { %v682_v22 = vpop.permute.xlu1 %681 }
 0xd70   :  { %684 = vst.msk [vmem:[#allocation2 + $0x8] sm:$0x3] %vm132_vm8, %v682_v22  ;;  %1758 = vmatmul.mubr.msk.f32.vlgmr.msra.gmra.mxu1 %vm134_vm9, %v682_v22 }
 0xd71   :  { %1772 = vmatpush3.msra.mxu1 %v1956_v3  ;;  %1779 = vmatprep.mubr.msk.f32.mxu1 %vm1920_vm0, %v1919_v5 }
 0xd72   :  { %1773 = vmatprep.subr.mxu1 %v1919_v5 }
 0xd73   :  { %1774 = vmatpush3.msra.mxu1 %v1969_v6 }
 0xd74   :  { %1775 = vmatprep.subr.mxu1 %v1919_v5 }
 0xd75   :  { %1776 = vmatpush3.msra.mxu1 %v1977_v9 }
 0xd76   :  { %1777 = vmatprep.subr.mxu1 %v1919_v5 }
 0xd77   :  { %1778 = vmatpush3.msra.mxu1 %v1992_v12 }
 0xd78   :  { %1797 = vmatprep.subr.mxu1 %v1919_v5 }
 0xe30   :  { %v753_v23 = vpop.f32.mrf.mxu1 }
 0xe31   :  { %v765_v3 = vadd.f32 %v753_v23, %v2039_v24  ;;  %v758_v27 = vrot.slane %v753_v23, 6 }
 0xe32   :  { %v1759_v25 = vpop.f32.mrf.mxu1 }
 0xe33   :  { %v767_v26 = vrot.slane %v765_v3, 6  ;;  %v760_v6 = vadd.f32 %v2043_v28, %v758_v27 }
 0xe35   :  { %768 = vrot.lane.b32.xlu0 %v767_v26, %s1922_s6  ;;  %v761_v30 = vmul.f32 0.5, %v760_v6 }
 0xe37   :  { %1880 = vtanh.f32 %v761_v30 }
 0xe44   :  { %v1881_v31 = vpop.eup %1880 }
 0xe45   :  { %v763_v9 = vmul.f32 0.5, %v1881_v31 }
 0xe47   :  { %v764_v32 = vadd.f32 0.5, %v763_v9 }
 0xe49   :  { %v778_v39 = vsub.f32 1.0, %v764_v32  ;;  %v786_v42 = vmul.f32 %v784_v38, %v764_v32 }
 0xea7   :  { %v769_v33 = vpop.permute.xlu0 %768 }
 0xea8   :  { %v771_v34 = vmul.f32 %v769_v33, %v764_v32 }
 0xeaa   :  { %773 = vrot.lane.b32.xlu1 %v771_v34, %s1922_s6 }
 0xf1c   :  { %v774_v12 = vpop.permute.xlu1 %773 }
 0xf1d   :  { %v776_v36 = vadd.f32 %v2043_v28, %v774_v12 }
 0xf1f   :  { %1882 = vtanh.f32 %v776_v36 }
 0xf2c   :  { %v1883_v37 = vpop.eup %1882 }
 0xf2d   :  { %780 = vrot.lane.b32.xlu0 %v1883_v37, %s1923_s11 }
 0xf9f   :  { %v781_v40 = vpop.permute.xlu0 %780 }
 0xfa0   :  { %v783_v41 = vmul.f32 %v781_v40, %v778_v39  ;;  %v1128_v39 = vld [vmem:[%s2301_s1 + $0x80] sm:$0xff]  ;;  %v1127_v40 = vld [vmem:[%s2301_s1 + $0x78] sm:$0xff] }
 0xfa2   :  { %v787_v43 = vadd.f32 %v786_v42, %v783_v41  ;;  %v1018_v42 = vld [vmem:[%s2301_s1 + $0x50] sm:$0xff] }
 0xfa4   :  { %v793_v44 = vrot.slane %v787_v43, 2  ;;  %v895_v62 = vrot.slane %v787_v43, 6 }
 0xfa6   :  { %794 = vrot.lane.b32.xlu1 %v793_v44, %s1923_s11  ;;  %v1126_v44 = vld [vmem:[%s2301_s1 + $0x70] sm:$0xff] }
0x1018   :  { %v795_v45 = vpop.permute.xlu1 %794 }
0x1019   :  { %1769 = vmatmul.mubr.msk.f32.vlgmr.msra.gmra.mxu0 %vm134_vm9, %v795_v45  ;;  %v1125_v45 = vld [vmem:[%s2301_s1 + $0x68] sm:$0xff] }
0x101a   :  { %1788 = vmatprep.mubr.msk.f32.mxu0 %vm1920_vm0, %v1919_v5 }
0x10d9   :  { %v864_v46 = vpop.f32.mrf.mxu0 }
0x10da   :  { %v876_v47 = vadd.f32 %v864_v46, %v2039_v24  ;;  %v869_v50 = vrot.slane %v864_v46, 4  ;;  %v1019_v46 = vld [vmem:[%s2301_s1 + $0x58] sm:$0xff] }
0x10db   :  { %v1770_v48 = vpop.f32.mrf.mxu0 }
0x10dc   :  { %v878_v49 = vrot.slane %v876_v47, 4  ;;  %v871_v51 = vadd.f32 %v2043_v28, %v869_v50  ;;  %v1020_v47 = vld [vmem:[%s2301_s1 + $0x60] sm:$0x3]  ;;  %v1131_v50 = vld [vmem:[%s2301_s1 + $0x98] sm:$0xff] }
0x10dd   :  { %v1132_v48 = vld [vmem:[%s2301_s1 + $0xa0] sm:$0xff] }
0x10de   :  { %879 = vrot.lane.b32.xlu0 %v878_v49, %s1922_s6  ;;  %v872_v52 = vmul.f32 0.5, %v871_v51 }
0x10e0   :  { %1884 = vtanh.f32 %v872_v52  ;;  %v1130_v52 = vld [vmem:[%s2301_s1 + $0x90] sm:$0xff] }
0x10ed   :  { %v1885_v53 = vpop.eup %1884 }
0x10ee   :  { %v874_v54 = vmul.f32 0.5, %v1885_v53 }
0x10f0   :  { %v875_v55 = vadd.f32 0.5, %v874_v54  ;;  %v1129_v54 = vld [vmem:[%s2301_s1 + $0x88] sm:$0xff] }
0x10f2   :  { %v889_v61 = vsub.f32 1.0, %v875_v55  ;;  %v897_v0 = vmul.f32 %v895_v62, %v875_v55 }
0x1150   :  { %v880_v56 = vpop.permute.xlu0 %879 }
0x1151   :  { %v882_v57 = vmul.f32 %v880_v56, %v875_v55 }
0x1153   :  { %884 = vrot.lane.b32.xlu1 %v882_v57, %s1922_s6 }
0x11c5   :  { %v885_v59 = vpop.permute.xlu1 %884 }
0x11c6   :  { %v887_v60 = vadd.f32 %v2043_v28, %v885_v59  ;;  %v1309_v59 = vld [vmem:[%s2302_s2] sm:$0xff] }
0x11c8   :  { %1886 = vtanh.f32 %v887_v60 }
0x11d5   :  { %v1887_v29 = vpop.eup %1886 }
0x11d6   :  { %891 = vrot.lane.b32.xlu0 %v1887_v29, %s1923_s11 }
0x1248   :  { %v892_v63 = vpop.permute.xlu0 %891 }
0x1249   :  { %v894_v1 = vmul.f32 %v892_v63, %v889_v61  ;;  %v1310_v61 = vld [vmem:[%s2302_s2 + $0x8] sm:$0xff] }
0x124b   :  { %v898_v4 = vadd.f32 %v897_v0, %v894_v1  ;;  %v1311_v0 = vld [vmem:[%s2302_s2 + $0x10] sm:$0x3] }
0x124d   :  { %v904_v7 = vrot.slane %v898_v4, 4  ;;  %v1006_v30 = vrot.slane %v898_v4, 6 }
0x124f   :  { %905 = vrot.lane.b32.xlu1 %v904_v7, %s1923_s11 }
0x12c1   :  { %v906_v8 = vpop.permute.xlu1 %905 }
0x12c2   :  { %1780 = vmatmul.mubr.msk.f32.vlgmr.msra.gmra.mxu1 %vm134_vm9, %v906_v8 }
0x12c3   :  { %1801 = vmatprep.mubr.msk.f32.mxu1 %vm1920_vm0, %v1919_v5  ;;  %1798 = vmatpush3.msra.mxu1 %v1128_v39 }
0x12c4   :  { %1799 = vmatprep.subr.mxu1 %v1919_v5 }
0x12c5   :  { %1800 = vmatpush3.msra.mxu1 %v1127_v40 }
0x12c6   :  { %1823 = vmatprep.subr.mxu1 %v1919_v5 }
0x1382   :  { %v975_v10 = vpop.f32.mrf.mxu1 }
0x1383   :  { %v987_v13 = vadd.f32 %v975_v10, %v2039_v24  ;;  %v980_v16 = vrot.slane %v975_v10, 2 }
0x1384   :  { %v1781_v14 = vpop.f32.mrf.mxu1 }
0x1385   :  { %v989_v15 = vrot.slane %v987_v13, 2  ;;  %v982_v17 = vadd.f32 %v2043_v28, %v980_v16 }
0x1387   :  { %990 = vrot.lane.b32.xlu0 %v989_v15, %s1922_s6  ;;  %v983_v18 = vmul.f32 0.5, %v982_v17 }
0x1389   :  { %1888 = vtanh.f32 %v983_v18 }
0x1396   :  { %v1889_v20 = vpop.eup %1888 }
0x1397   :  { %v985_v21 = vmul.f32 0.5, %v1889_v20 }
0x1399   :  { %v986_v22 = vadd.f32 0.5, %v985_v21 }
0x139b   :  { %v1000_v6 = vsub.f32 1.0, %v986_v22 }
0x13f9   :  { %v991_v23 = vpop.permute.xlu0 %990 }
0x13fa   :  { %v993_v3 = vmul.f32 %v991_v23, %v986_v22 }
0x13fc   :  { %995 = vrot.lane.b32.xlu1 %v993_v3, %s1922_s6 }
0x1400   :  { %789 = vrot.lane.b32.xlu1 %v787_v43, %s1923_s11 }
0x146e   :  { %v996_v25 = vpop.permute.xlu1 %995 }
0x146f   :  { %v998_v24 = vadd.f32 %v2043_v28, %v996_v25  ;;  %v1008_v28 = vmul.f32 %v1006_v30, %v986_v22 }
0x1471   :  { %1890 = vtanh.f32 %v998_v24 }
0x1472   :  { %v790_v26 = vpop.permute.xlu1 %789 }
0x1473   :  { %792 = vst.msk [vmem:[#allocation2 + $0x8] sm:$0xc] %vm353_vm10, %v790_v26 }
0x147e   :  { %v1891_v27 = vpop.eup %1890 }
0x147f   :  { %1002 = vrot.lane.b32.xlu0 %v1891_v27, %s1923_s11  ;;  %v1476_v27 = vld [vmem:[%s2301_s1 + $0xb0] sm:$0xff] }
0x1483   :  { %900 = vrot.lane.b32.xlu0 %v898_v4, %s1923_s11 }
0x1487   :  { %350 = vrot.lane.b32.xlu0 %v2072_v2, %s1923_s11  ;;  %v1017_v2 = vld [vmem:[#allocation2 + $0x10] sm:$0x3] }
0x148b   :  { %574 = vrot.lane.b32.xlu0 %v2116_v58, %s1923_s11 }
0x14f1   :  { %v1003_v31 = vpop.permute.xlu0 %1002 }
0x14f2   :  { %v1005_v9 = vmul.f32 %v1003_v31, %v1000_v6  ;;  %v1475_v6 = vld [vmem:[%s2301_s1 + $0xa8] sm:$0xff]  ;;  %s1925_s1 = smov 80  }
0x14f4   :  { %v1009_v32 = vadd.f32 %v1008_v28, %v1005_v9 }
0x14f5   :  { %v901_v33 = vpop.permute.xlu0 %900 }
0x14f6   :  { %903 = vst.msk [vmem:[#allocation2 + $0x8] sm:$0x30] %vm465_vm11, %v901_v33  ;;  %1011 = vrot.lane.b32.xlu1 %v1009_v32, %s1923_s11 }
0x14f9   :  { %v351_v34 = vpop.permute.xlu0 %350 }
0x14fa   :  { %354 = vst.msk [vmem:[#allocation2] sm:$0xc] %vm353_vm10, %v351_v34  ;;  %462 = vrot.lane.b32.xlu1 %v2094_v35, %s1923_s11 }
0x14fd   :  { %v575_v58 = vpop.permute.xlu0 %574 }
0x14fe   :  { %578 = vst.msk [vmem:[#allocation2] sm:$0xc0] %vm577_vm12, %v575_v58  ;;  %1028 = vrot.lane.b32.xlu1 %v1017_v2, %s1924_s12 }
0x1568   :  { %v1012_v12 = vpop.permute.xlu1 %1011 }
0x1569   :  { %1014 = vst.msk [vmem:[#allocation2 + $0x8] sm:$0xc0] %vm577_vm12, %v1012_v12 }
0x156c   :  { %v463_v36 = vpop.permute.xlu1 %462 }
0x156d   :  { %466 = vst.msk [vmem:[#allocation2] sm:$0x30] %vm465_vm11, %v463_v36  ;;  %v1437_v36 = vand.u32 7, %v2021_v19 }
0x156f   :  { %vm1445_vm2 = vcmp.lt.s32.totalorder %v1437_v36, 4 }
0x1570   :  { %v1016_v37 = vld [vmem:[#allocation2 + $0x8] sm:$0xff]  ;;  %v1029_v38 = vpop.permute.xlu1 %1028 }
0x1571   :  { %1026 = vrot.lane.b32.xlu0 %v1016_v37, %s1924_s12  ;;  %1783 = vmatpush3.msk.msra.mxu0 %vm1042_vm13, %v1029_v38 }
0x1572   :  { %1784 = vmatprep.subr.mxu0 %v1919_v5 }
0x1574   :  { %v1015_v35 = vld [vmem:[#allocation2] sm:$0xff] }
0x1575   :  { %1024 = vrot.lane.b32.xlu1 %v1015_v35, %s1924_s12 }
0x15e3   :  { %v1027_v41 = vpop.permute.xlu0 %1026 }
0x15e4   :  { %1785 = vmatpush3.msra.mxu0 %v1027_v41 }
0x15e5   :  { %1786 = vmatprep.subr.mxu0 %v1919_v5 }
0x15e7   :  { %v1025_v43 = vpop.permute.xlu1 %1024 }
0x15e8   :  { %1787 = vmatpush3.msra.mxu0 %v1025_v43 }
0x15e9   :  { %1789 = vmatmul.mubr.msk.f32.vlgmr.msra.gmra.mxu0 %vm1032_vm14, %v1018_v42  ;;  %1810 = vmatprep.subr.mxu0 %v1919_v5 }
0x15ea   :  { %1791 = vmatprep.mubr.msk.f32.mxu0 %vm1920_vm0, %v1919_v5  ;;  %1811 = vmatpush3.msra.mxu0 %v1126_v44 }
0x15eb   :  { %1812 = vmatprep.subr.mxu0 %v1919_v5 }
0x15ec   :  { %1813 = vmatpush3.msra.mxu0 %v1125_v45 }
0x15ed   :  { %1792 = vmatmul.mubr.msk.f32.gmra.mxu0 %vm1032_vm14, %v1019_v46  ;;  %1840 = vmatprep.subr.mxu0 %v1919_v5 }
0x15ee   :  { %1794 = vmatprep.mubr.msk.f32.mxu0 %vm1920_vm0, %v1919_v5 }
0x15f1   :  { %1795 = vmatmul.mubr.msk.f32.gmra.mxu0 %vm1032_vm14, %v1020_v47 }
0x15f2   :  { %1814 = vmatprep.mubr.msk.f32.mxu0 %vm1920_vm0, %v1919_v5 }
0x15f5   :  { %1815 = vmatmul.mubr.msk.f32.vlgmr.msra.gmra.mxu0 %vm1133_vm15, %v1015_v35 }
0x15f6   :  { %1817 = vmatprep.mubr.msk.f32.mxu0 %vm1920_vm0, %v1919_v5  ;;  %1841 = vmatpush3.msra.mxu0 %v1476_v27 }
0x15f7   :  { %1842 = vmatprep.subr.mxu0 %v1919_v5 }
0x15f8   :  { %1843 = vmatpush3.msra.mxu0 %v1475_v6 }
0x15f9   :  { %1818 = vmatmul.mubr.msk.f32.gmra.mxu0 %vm1133_vm15, %v1016_v37 }
0x15fa   :  { %1820 = vmatprep.mubr.msk.f32.mxu0 %vm1920_vm0, %v1919_v5 }
0x15fd   :  { %1821 = vmatmul.mubr.msk.f32.gmra.mxu0 %vm1133_vm15, %v1017_v2 }
0x15fe   :  { %1844 = vmatprep.mubr.msk.f32.mxu0 %vm1920_vm0, %v1919_v5 }
0x16a9   :  { %v1111_v49 = vpop.f32.mrf.mxu0 }
0x16aa   :  { %1802 = vmatmul.mubr.msk.f32.vlgmr.msra.gmra.mxu1 %vm1133_vm15, %v1111_v49 }
0x16ab   :  { %1824 = vmatpush3.msra.mxu1 %v1132_v48  ;;  %v1790_v51 = vpop.f32.mrf.mxu0  ;;  %1804 = vmatprep.mubr.msk.f32.mxu1 %vm1920_vm0, %v1919_v5 }
0x16ac   :  { %1825 = vmatprep.subr.mxu1 %v1919_v5 }
0x16ad   :  { %v1116_v53 = vpop.f32.mrf.mxu0  ;;  %1826 = vmatpush3.msra.mxu1 %v1131_v50 }
0x16ae   :  { %1805 = vmatmul.mubr.msk.f32.gmra.mxu1 %vm1133_vm15, %v1116_v53  ;;  %1827 = vmatprep.subr.mxu1 %v1919_v5 }
0x16af   :  { %v1793_v55 = vpop.f32.mrf.mxu0  ;;  %1828 = vmatpush3.msra.mxu1 %v1130_v52  ;;  %1807 = vmatprep.mubr.msk.f32.mxu1 %vm1920_vm0, %v1919_v5 }
0x16b0   :  { %1829 = vmatprep.subr.mxu1 %v1919_v5 }
0x16b1   :  { %v1121_v56 = vpop.f32.mrf.mxu0  ;;  %1830 = vmatpush3.msra.mxu1 %v1129_v54 }
0x16b2   :  { %1808 = vmatmul.mubr.msk.f32.gmra.mxu1 %vm1133_vm15, %v1121_v56 }
0x16b3   :  { %v1796_v57 = vpop.f32.mrf.mxu0  ;;  %1831 = vmatprep.mubr.msk.f32.mxu1 %vm1920_vm0, %v1919_v5 }
0x16b5   :  { %v1295_v60 = vpop.f32.mrf.mxu0 }
0x16b6   :  { %1832 = vmatmul.mubr.msk.f32.vlgmr.msra.gmra.mxu1 %vm134_vm9, %v1309_v59 }
0x16b7   :  { %v1816_v29 = vpop.f32.mrf.mxu0  ;;  %1834 = vmatprep.mubr.msk.f32.mxu1 %vm1920_vm0, %v1919_v5 }
0x16b9   :  { %v1300_v62 = vpop.f32.mrf.mxu0 }
0x16ba   :  { %1835 = vmatmul.mubr.msk.f32.gmra.mxu1 %vm134_vm9, %v1310_v61 }
0x16bb   :  { %v1819_v63 = vpop.f32.mrf.mxu0  ;;  %1837 = vmatprep.mubr.msk.f32.mxu1 %vm1920_vm0, %v1919_v5  ;;  %vm1406_vm0 = vcmask 1045504  }
0x16bd   :  { %v1305_v1 = vpop.f32.mrf.mxu0 }
0x16be   :  { %1838 = vmatmul.mubr.msk.f32.gmra.mxu1 %vm134_vm9, %v1311_v0 }
0x16bf   :  { %v1822_v4 = vpop.f32.mrf.mxu0 }
0x176a   :  { %v1209_v7 = vpop.f32.mrf.mxu1 }
0x176b   :  { %v1296_v17 = vadd.f32 %v1295_v60, %v1209_v7 }
0x176c   :  { %v1803_v8 = vpop.f32.mrf.mxu1 }
0x176e   :  { %v1214_v10 = vpop.f32.mrf.mxu1 }
0x176f   :  { %v1301_v20 = vadd.f32 %v1300_v62, %v1214_v10 }
0x1770   :  { %v1806_v13 = vpop.f32.mrf.mxu1 }
0x1772   :  { %v1219_v14 = vpop.f32.mrf.mxu1 }
0x1773   :  { %v1306_v25 = vadd.f32 %v1305_v1, %v1219_v14 }
0x1774   :  { %v1809_v15 = vpop.f32.mrf.mxu1 }
0x1776   :  { %v1387_v16 = vpop.f32.mrf.mxu1 }
0x1777   :  { %v1401_v21 = vadd.f32 %v1387_v16, %v1296_v17 }
0x1778   :  { %v1833_v18 = vpop.f32.mrf.mxu1 }
0x1779   :  { %v1407_v24 = vrot.slane %v1401_v21, 2  ;;  %v1420_v33 = vrot.slane %v1401_v21, 4 }
0x177a   :  { %v1392_v22 = vpop.f32.mrf.mxu1 }
0x177b   :  { %v1402_v23 = vadd.f32 %v1392_v22, %v1301_v20 }
0x177c   :  { %v1836_v3 = vpop.f32.mrf.mxu1 }
0x177d   :  { %v1408_v26 = vrot.slane %v1402_v23, 2  ;;  %v1421_v31 = vrot.slane %v1402_v23, 4 }
0x177e   :  { %v1397_v30 = vpop.f32.mrf.mxu1 }
0x177f   :  { %v1403_v28 = vadd.f32 %v1397_v30, %v1306_v25  ;;  %1412 = vrot.lane.b32.xlu1 %v1408_v26, %s1924_s12  ;;  %v1409_v9 = vsel %vm1406_vm0, %v1407_v24, %v1408_v26  ;;  %v1422_v2 = vsel %vm1419_vm1, %v1420_v33, %v1421_v31 }
0x1780   :  { %v1839_v32 = vpop.f32.mrf.mxu1  ;;  %1410 = vrot.lane.b32.xlu0 %v1409_v9, %s1924_s12 }
0x1781   :  { %v1423_v34 = vrot.slane %v1403_v28, 4 }
0x1783   :  { %v1424_v58 = vsel %vm1419_vm1, %v1421_v31, %v1423_v34 }
0x1784   :  { %1425 = vrot.lane.b32.xlu0 %v1422_v2, %s1923_s11  ;;  %1427 = vrot.lane.b32.xlu1 %v1424_v58, %s1923_s11 }
0x1788   :  { %1470 = vrot.lane.b32.xlu0 %v1986_v11, %s1923_s11  ;;  %1477 = vrot.lane.b32.xlu1 %v1986_v11, %s1925_s1  ;;  %s1926_s11 = smov [#allocation3]  }
0x1789   :  { %s1572_s12 = sshll.u32 %s1926_s11, 4  ;;  %s1573_s12 = int_to_ptr.vmem [resolvable:$true] %s1572_s12 }
0x178a   :  { %s1896_s18 = scalar_lea.vmem %s1573_s12, 32  ;;  %p1901_p1 = scmp.lt.s32.totalorder %s1573_s12, %s1573_s12 }
0x178b   :  { %p1897_p0 = scmp.ne.s32.totalorder %s1573_s12, %s1896_s18  ;;  %p1902_p2 = scmp.lt.s32.totalorder %s1896_s18, %s1896_s18 }
0x178d   :  { %p1903_p3 = por %p1902_p2, %p1901_p1 }
0x178f   :  { %p1904_p4 = pnand %p1903_p3, %p1897_p0 }
0x17f1   :  { %v1413_v5 = vpop.permute.xlu1 %1412 }
0x17f2   :  { %v1411_v12 = vpop.permute.xlu0 %1410  ;;  %v1417_v37 = vadd.f32 %v1413_v5, %v1402_v23 }
0x17f3   :  { %v1416_v38 = vadd.f32 %v1411_v12, %v1401_v21 }
0x17f6   :  { %v1426_v35 = vpop.permute.xlu0 %1425  ;;  %v1428_v39 = vpop.permute.xlu1 %1427 }
0x17f7   :  { %v1431_v40 = vadd.f32 %v1426_v35, %v1416_v38  ;;  %v1432_v41 = vadd.f32 %v1428_v39, %v1417_v37 }
0x17f9   :  { %v1448_v42 = vrot.slane %v1431_v40, 2  ;;  %v1446_v43 = vsel %vm1445_vm2, %v1432_v41, -inf  ;;  %v1452_v44 = vrot.slane %v1432_v41, 2 }
0x17fa   :  { %v1460_v47 = vrot.slane %v1446_v43, 4  ;;  %v1471_v50 = vpop.permute.xlu0 %1470  ;;  %v1478_v53 = vpop.permute.xlu1 %1477 }
0x17fb   :  { %v1450_v45 = vmax.f32 %v1431_v40, %v1448_v42  ;;  %v1454_v46 = vmax.f32 %v1432_v41, %v1452_v44 }
0x17fd   :  { %v1456_v48 = vrot.slane %v1450_v45, 4  ;;  %v1462_v11 = vmax.f32 %v1454_v46, %v1460_v47 }
0x17ff   :  { %v1458_v49 = vmax.f32 %v1450_v45, %v1456_v48 }
0x1801   :  { %v1463_v51 = vmax.f32 %v1458_v49, %v1462_v11 }
0x1803   :  { %v1473_v52 = vadd.f32 %v1471_v50, %v1463_v51 }
0x1805   :  { %v1474_v19 = vmax.f32 %v1473_v52, 0.0 }
0x1807   :  { %1845 = vmatmul.mubr.msk.f32.vlgmr.msra.gmra.mxu0 %vm1133_vm15, %v1474_v19 }
0x18c7   :  { %v1549_v54 = vpop.f32.mrf.mxu0 }
0x18c8   :  { %v1550_v55 = vadd.f32 %v1549_v54, %v1478_v53 }
0x18c9   :  { %v1846_v56 = vpop.f32.mrf.mxu0 }
0x18ca   :  { %v1554_v57 = vsel %vm1553_vm3, %v1550_v55, -inf }
0x18cb   :  { %1555 = vmax.xlane.f32.xlu0 %v1554_v57 }
0x1954   :  { %v1556_v59 = vpop.xlane.xlu0 %1555 }
0x1955   :  { %v1557_v60 = vsub.f32 %v1550_v55, %v1556_v59 }
0x1957   :  { %v1558_v29 = vmul.f32 1.442695, %v1557_v60 }
0x1959   :  { %1892 = vpow2.f32 %v1558_v29 }
0x1966   :  { %v1893_v61 = vpop.eup %1892 }
0x1967   :  { %v1560_v62 = vsel %vm1553_vm3, %v1893_v61, 0.0 }
0x1968   :  { %1561 = vadd.xlane.f32.xlu1 %v1560_v62 }
0x19f1   :  { %v1562_v63 = vpop.xlane.xlu1 %1561 }
0x19f2   :  { %1894 = vrcp.f32 %v1562_v63 }
0x19ff   :  { %v1895_v0 = vpop.eup %1894 }
0x1a00   :  { %v1564_v1 = vmul.f32 %v1895_v0, %v1893_v61 }
0x1a02   :  { %1565 = vst.msk [vmem:[#allocation3] sm:$0x3] %vm1553_vm3, %v1564_v1 }
0x1a03   :  { %1907 = shalt.err (!%p1904_p4)
}
0x1a04   :  { %1575 = dma.vmem_to_hbm [thread:$0]  %s1573_s12, 32, %s2303_s3, [#allocation4]  }
0x1a05   :  { %1916 = dma.done.wait [#allocation4], 32  }
0x1a06   :  { %1917 = vsyncadd [#allocation4], 4294967264 }
0x1a07   :  { %1579 = vsyncpa [#allocation4], 1 }

</bundles_post_ra>
